<compile_context>
chip_gen: v6e
topology: v6e:2x2x1
jax: 0.10.0
libtpu: 0.0.40
codegen_flags: <defaults>
</compile_context>

<pallas_src>
import functools

import jax
import jax.numpy as jnp
from jax import lax
from jax.experimental import pallas as pl
from jax.experimental.pallas import tpu as pltpu


# ----------------------------------------------------------------------------------
# Fused per-layer kernel: per-chunk input projection + T-step LSTM recurrence
# ----------------------------------------------------------------------------------
def _lstm_fused_chunk_kernel(x_ref, bias_ref, h0_ref, c0_ref, wih_hbm, whh_hbm,
                             h_seq_ref, hn_ref, cn_ref,
                             wih_vmem, whh_vmem, gx_vmem, h_carry, c_carry, dma_sems,
                             *, hidden_pad, batch_pad, time_chunk, seq_len, unroll):
    """One grid step = `time_chunk` LSTM time steps.

    x_ref:     (T*Bp, I)       input slab for this chunk (time-major, batch padded to Bp)
    bias_ref:  (1, 4Hp) f32    b_ih + b_hh, gate-block lane-padded
    h0/c0_ref: (Bp, Hp) f32    initial states (used only at chunk 0)
    wih_hbm:   (I, 4Hp)  HBM   copied once into wih_vmem
    whh_hbm:   (Hp, 4Hp) HBM   copied once into whh_vmem
    h_seq_ref: (T*Bp, Hp)      per-step hidden outputs for this chunk
    hn/cn_ref: (Bp, Hp) f32    final states (resident blocks, last write wins)
    gx_vmem:   (T*Bp, 4Hp) f32 chunk-local gates_x scratch (never hits HBM)
    h_carry/c_carry: (Bp, Hp) f32 state carried across grid steps
    """
    chunk = pl.program_id(0)
    T, Bp, Hp = time_chunk, batch_pad, hidden_pad

    @pl.when(chunk == 0)
    def _init():
        # Load both weights exactly once; they stay resident (single-buffered) in VMEM.
        cp_ih = pltpu.make_async_copy(wih_hbm, wih_vmem, dma_sems.at[0])
        cp_hh = pltpu.make_async_copy(whh_hbm, whh_vmem, dma_sems.at[1])
        cp_ih.start()
        cp_hh.start()
        cp_ih.wait()
        cp_hh.wait()
        h_carry[...] = h0_ref[...].astype(jnp.float32)
        c_carry[...] = c0_ref[...].astype(jnp.float32)

    w_ih = wih_vmem[...]
    w_hh = whh_vmem[...]
    mm_dtype = w_ih.dtype

    # Fused, hoisted input projection for the whole chunk: one lane-dense
    # (T*Bp, I) x (I, 4Hp) MXU matmul; the f32 result stays in VMEM scratch.
    gx_vmem[...] = (jnp.dot(x_ref[...].astype(mm_dtype), w_ih,
                            preferred_element_type=jnp.float32) + bias_ref[...])

    base = chunk * T
    has_tail = (seq_len % T) != 0

    def step(t, carry):
        h, c = carry
        row = pl.multiple_of(t * Bp, 8)                       # sublane-aligned start
        g_x = gx_vmem[pl.ds(row, Bp), :]                      # (Bp, 4Hp) f32
        gates = jnp.dot(h.astype(mm_dtype), w_hh,
                        preferred_element_type=jnp.float32) + g_x
        # PyTorch gate order [i, f, g, o]; each slice is 128-lane aligned (Hp % 128 == 0),
        # gate math stays f32 (safe on v5e: no bf16 VPU/EUP).
        i_g = jax.nn.sigmoid(gates[:, 0 * Hp:1 * Hp])
        f_g = jax.nn.sigmoid(gates[:, 1 * Hp:2 * Hp])
        g_g = jnp.tanh(gates[:, 2 * Hp:3 * Hp])
        o_g = jax.nn.sigmoid(gates[:, 3 * Hp:4 * Hp])
        c_new = f_g * c + i_g * g_g
        h_new = o_g * jnp.tanh(c_new)
        h_seq_ref[pl.ds(row, Bp), :] = h_new.astype(h_seq_ref.dtype)
        if has_tail:
            # Last chunk may contain padded time steps; don't let them update the state.
            valid = (base + t) < seq_len
            h_new = jnp.where(valid, h_new, h)
            c_new = jnp.where(valid, c_new, c)
        return (h_new, c_new)

    h, c = lax.fori_loop(0, T, step, (h_carry[...], c_carry[...]), unroll=unroll)

    h_carry[...] = h
    c_carry[...] = c
    hn_ref[...] = h          # resident output block: last chunk's write is the final state
    cn_ref[...] = c


# ----------------------------------------------------------------------------------
# Sizing helpers
# ----------------------------------------------------------------------------------
def _round_up(v, m):
    return (v + m - 1) // m * m


def _vmem_limit_bytes():
    """Generation-aware VMEM limit: ~85% of capacity (v5e/v6e ~109 MiB, v7x ~54 MiB)."""
    cap = 64 * 1024 * 1024  # v7x-safe fallback
    try:
        info = pltpu.get_tpu_info()
        cap = int(getattr(info, "vmem_capacity_bytes", cap)) or cap
    except Exception:
        pass
    return int(cap * 0.85)


def _derive_time_chunk(L, Bp, I, Hp, *, x_bytes, out_bytes, w_bytes, budget, max_chunk):
    """Largest T such that the chunk's VMEM working set fits the planning budget."""
    H4p = 4 * Hp
    fixed = (I * H4p + Hp * H4p) * w_bytes   # resident single-buffered weights
    fixed += 2 * H4p * 4                     # bias blocks (double-buffered, tiny)
    fixed += 8 * Bp * Hp * 4                 # h0/c0/hn/cn blocks + f32 carries
    per_t = Bp * (2 * I * x_bytes            # x chunk (double-buffered)
                  + H4p * 4                  # gates_x scratch (single-buffered)
                  + 2 * Hp * out_bytes)      # h_seq chunk output (double-buffered)
    avail = budget - fixed
    t = avail // per_t if avail > per_t else 1
    return int(max(1, min(L, max_chunk, t)))


# ----------------------------------------------------------------------------------
# Layer wrapper
# ----------------------------------------------------------------------------------
def lstm_layer_pallas(x, w_ih_p, w_hh_p, bias_p, h0, c0, *, hidden_size,
                      out_dtype=None, max_time_chunk=256):
    """One LSTM layer over the full sequence.

    x: (L, B, I); w_ih_p: (I, 4Hp); w_hh_p: (Hp, 4Hp); bias_p: (1, 4Hp) f32 (gate-padded);
    h0/c0: (B, H) f32.  Returns (h_seq (L, B, H) in out_dtype, h_n (B, H), c_n (B, H)).
    """
    L, B, I = x.shape
    H = hidden_size
    Hp = w_hh_p.shape[0]
    H4p = 4 * Hp
    assert w_ih_p.shape == (I, H4p) and bias_p.shape == (1, H4p)
    Bp = _round_up(max(B, 1), 8)
    out_dtype = x.dtype if out_dtype is None else out_dtype

    limit = _vmem_limit_bytes()
    T = _derive_time_chunk(
        L, Bp, I, Hp,
        x_bytes=jnp.dtype(x.dtype).itemsize,
        out_bytes=jnp.dtype(out_dtype).itemsize,
        w_bytes=jnp.dtype(w_ih_p.dtype).itemsize,
        budget=limit // 2,                    # headroom for compiler scratch
        max_chunk=max_time_chunk)
    n_chunks = (L + T - 1) // T
    L_pad = n_chunks * T
    M_blk = T * Bp

    # Pad to lane/sublane-dense shapes: B -> multiple of 8 (sublanes), H -> multiple of 128
    # (lanes, baked into the packed weights), L -> multiple of T (tail masked in-kernel).
    x_p = jnp.pad(x, ((0, L_pad - L), (0, Bp - B), (0, 0))).reshape(L_pad * Bp, I)
    h0_p = jnp.pad(h0.astype(jnp.float32), ((0, Bp - B), (0, Hp - H)))
    c0_p = jnp.pad(c0.astype(jnp.float32), ((0, Bp - B), (0, Hp - H)))

    kernel = functools.partial(
        _lstm_fused_chunk_kernel, hidden_pad=Hp, batch_pad=Bp, time_chunk=T,
        seq_len=L, unroll=int(max(1, min(8, T))))

    h2, h_n, c_n = pl.pallas_call(
        kernel,
        out_shape=(
            jax.ShapeDtypeStruct((L_pad * Bp, Hp), out_dtype),
            jax.ShapeDtypeStruct((Bp, Hp), jnp.float32),
            jax.ShapeDtypeStruct((Bp, Hp), jnp.float32),
        ),
        grid_spec=pltpu.PrefetchScalarGridSpec(
            num_scalar_prefetch=0,
            grid=(n_chunks,),
            in_specs=[
                pl.BlockSpec((M_blk, I), lambda c: (c, 0)),    # x chunk
                pl.BlockSpec((1, H4p), lambda c: (0, 0)),      # bias (resident)
                pl.BlockSpec((Bp, Hp), lambda c: (0, 0)),      # h0
                pl.BlockSpec((Bp, Hp), lambda c: (0, 0)),      # c0
                pl.BlockSpec(memory_space=pl.ANY),             # W_ih (copied once to VMEM)
                pl.BlockSpec(memory_space=pl.ANY),             # W_hh (copied once to VMEM)
            ],
            out_specs=(
                pl.BlockSpec((M_blk, Hp), lambda c: (c, 0)),   # h sequence chunk
                pl.BlockSpec((Bp, Hp), lambda c: (0, 0)),      # h_n (resident)
                pl.BlockSpec((Bp, Hp), lambda c: (0, 0)),      # c_n (resident)
            ),
            scratch_shapes=[
                pltpu.VMEM((I, H4p), w_ih_p.dtype),     # resident W_ih (single-buffered)
                pltpu.VMEM((Hp, H4p), w_hh_p.dtype),    # resident W_hh (single-buffered)
                pltpu.VMEM((M_blk, H4p), jnp.float32),  # per-chunk gates_x (never hits HBM)
                pltpu.VMEM((Bp, Hp), jnp.float32),      # h carry
                pltpu.VMEM((Bp, Hp), jnp.float32),      # c carry
                pltpu.SemaphoreType.DMA((2,)),          # weight-load DMA semaphores
            ],
        ),
        compiler_params=pltpu.CompilerParams(
            dimension_semantics=("arbitrary",),
            vmem_limit_bytes=limit),
    )(x_p, bias_p, h0_p, c0_p, w_ih_p, w_hh_p)

    h_seq = h2.reshape(L_pad, Bp, Hp)[:L, :B, :H]
    return h_seq, h_n[:B, :H], c_n[:B, :H]


# ----------------------------------------------------------------------------------
# Parameter packing (gate-block lane padding) and module wrapper
# ----------------------------------------------------------------------------------
def _pack_gates_lane_padded(w, H, Hp, dtype):
    """(rows, 4H) -> (rows, 4Hp): each PyTorch gate block [i,f,g,o] goes into the first H
    lanes of its 128-aligned Hp-wide block; padded lanes are zero, so padded hidden columns
    stay exactly zero through the recurrence and numerics are unchanged."""
    rows = w.shape[0]
    out = jnp.zeros((rows, 4 * Hp), dtype)
    for g in range(4):
        out = out.at[:, g * Hp:g * Hp + H].set(w[:, g * H:(g + 1) * H].astype(dtype))
    return out


class LSTMPallas:
    """Forward-pass mirror of the PyTorch `LSTM` module (nn.LSTM + stateful h0/c0)."""

    def __init__(self, input_size, hidden_size, batch_size, num_layers=1,
                 dropout=0.1, use_gpu=False, key=None,
                 mxu_dtype=jnp.bfloat16, max_time_chunk=256):
        self.input_size = input_size
        self.hidden_size = hidden_size
        self.batch_size = batch_size
        self.num_layers = num_layers
        # NOTE: the reference module never passes `dropout` into nn.LSTM, so its forward has
        # no dropout at all; nothing to implement here.
        self.dropout = dropout
        self.max_time_chunk = max_time_chunk
        self.act_dtype = mxu_dtype   # inter-layer / h_seq writeback dtype (bf16 halves HBM)

        if key is None:
            key = jax.random.PRNGKey(0)
        H = hidden_size
        Hp = _round_up(H, 128)
        self.hidden_pad = Hp
        k = 1.0 / (hidden_size ** 0.5)
        self.params = []
        for layer in range(num_layers):
            in_dim = input_size if layer == 0 else hidden_size
            key, k1, k2, k3, k4 = jax.random.split(key, 5)
            # Same init distribution as torch nn.LSTM: U(-1/sqrt(H), 1/sqrt(H)).
            w_ih = jax.random.uniform(k1, (4 * H, in_dim), jnp.float32, -k, k)
            w_hh = jax.random.uniform(k2, (4 * H, H), jnp.float32, -k, k)
            b_ih = jax.random.uniform(k3, (4 * H,), jnp.float32, -k, k)
            b_hh = jax.random.uniform(k4, (4 * H,), jnp.float32, -k, k)
            w_ih_p = _pack_gates_lane_padded(w_ih.T, H, Hp, mxu_dtype)        # (in_dim, 4Hp)
            w_hh_p = jnp.pad(_pack_gates_lane_padded(w_hh.T, H, Hp, mxu_dtype),
                             ((0, Hp - H), (0, 0)))                           # (Hp, 4Hp)
            bias_p = _pack_gates_lane_padded((b_ih + b_hh).reshape(1, 4 * H),
                                             H, Hp, jnp.float32)              # (1, 4Hp) f32
            self.params.append((w_ih_p, w_hh_p, bias_p))
        self.init_hidden()

    def init_hidden(self):
        shape = (self.num_layers, self.batch_size, self.hidden_size)
        self.h0 = jnp.zeros(shape, jnp.float32)
        self.c0 = jnp.zeros(shape, jnp.float32)

    def forward(self, x):
        """x: (L, B, input_size) -> h: (L, B, hidden_size); updates self.h0/self.c0."""
        h = x
        h_n, c_n = [], []
        for layer, (w_ih_p, w_hh_p, bias_p) in enumerate(self.params):
            h, hn, cn = lstm_layer_pallas(
                h, w_ih_p, w_hh_p, bias_p, self.h0[layer], self.c0[layer],
                hidden_size=self.hidden_size, out_dtype=self.act_dtype,
                max_time_chunk=self.max_time_chunk)
            h_n.append(hn)
            c_n.append(cn)
        self.h0 = jnp.stack(h_n)
        self.c0 = jnp.stack(c_n)
        return h.astype(x.dtype)   # preserve the module's external dtype contract


# ----------------------------------------------------------------------------------
# Pure-JAX reference (lax.scan), mirroring the kernel's padding/dtype handling exactly.
# ----------------------------------------------------------------------------------
def _lstm_layer_ref(x, w_ih_p, w_hh_p, bias_p, h0, c0, *, hidden_size, out_dtype):
    L, B, I = x.shape
    H = hidden_size
    Hp = w_hh_p.shape[0]
    mm_dtype = w_ih_p.dtype
    gx = (jnp.dot(x.reshape(L * B, I).astype(mm_dtype), w_ih_p,
                  preferred_element_type=jnp.float32) + bias_p).reshape(L, B, 4 * Hp)
    h0p = jnp.pad(h0.astype(jnp.float32), ((0, 0), (0, Hp - H)))
    c0p = jnp.pad(c0.astype(jnp.float32), ((0, 0), (0, Hp - H)))

    def step(carry, g_x):
        h_prev, c_prev = carry
        gates = g_x + jnp.dot(h_prev.astype(mm_dtype), w_hh_p,
                              preferred_element_type=jnp.float32)
        i = jax.nn.sigmoid(gates[:, 0 * Hp:1 * Hp])
        f = jax.nn.sigmoid(gates[:, 1 * Hp:2 * Hp])
        g = jnp.tanh(gates[:, 2 * Hp:3 * Hp])
        o = jax.nn.sigmoid(gates[:, 3 * Hp:4 * Hp])
        c = f * c_prev + i * g
        h = o * jnp.tanh(c)
        return (h, c), h

    (h_n, c_n), hs = jax.lax.scan(step, (h0p, c0p), gx)
    return hs[:, :, :H].astype(out_dtype), h_n[:, :H], c_n[:, :H]


def _ref_forward(x, params, states_h, states_c, hidden_size, act_dtype):
    h = x
    new_h, new_c = [], []
    for (w_ih_p, w_hh_p, bias_p), h0l, c0l in zip(params, states_h, states_c):
        h, hn, cn = _lstm_layer_ref(h, w_ih_p, w_hh_p, bias_p, h0l, c0l,
                                    hidden_size=hidden_size, out_dtype=act_dtype)
        new_h.append(hn)
        new_c.append(cn)
    return h.astype(x.dtype), new_h, new_c


if __name__ == "__main__":
    seq_len, batch, input_size, hidden_size, num_layers = 8, 2, 16, 32, 2

    key = jax.random.PRNGKey(0)
    kx, kp = jax.random.split(key)
    x = jax.random.normal(kx, (seq_len, batch, input_size), jnp.float32)
    zeros = jnp.zeros((batch, hidden_size), jnp.float32)

    # --- f32-weight model: tight parity check against the pure-JAX reference ---
    model = LSTMPallas(input_size, hidden_size, batch, num_layers=num_layers,
                       key=kp, mxu_dtype=jnp.float32)
    h1 = jax.block_until_ready(model.forward(x))
    assert h1.shape == (seq_len, batch, hidden_size)

    h1_ref, sh, sc = _ref_forward(x, model.params, [zeros] * num_layers,
                                  [zeros] * num_layers, hidden_size, jnp.float32)
    h1_ref = jax.block_until_ready(h1_ref)
    assert jnp.allclose(h1, h1_ref, atol=1e-4, rtol=1e-4)
    assert jnp.allclose(model.h0[-1], sh[-1], atol=1e-4, rtol=1e-4)
    assert jnp.allclose(model.c0[-1], sc[-1], atol=1e-4, rtol=1e-4)

    # Statefulness: a second forward starts from the carried (h0, c0) per layer.
    h2 = jax.block_until_ready(model.forward(x))
    h2_ref, sh, sc = _ref_forward(x, model.params, sh, sc, hidden_size, jnp.float32)
    assert jnp.allclose(h2, h2_ref, atol=1e-4, rtol=1e-4)
    assert jnp.allclose(model.h0[-1], sh[-1], atol=1e-4, rtol=1e-4)

    # --- bf16-weight model (recommended MXU path on v5e/v6e/v7x): looser tolerance ---
    model_bf16 = LSTMPallas(input_size, hidden_size, batch, num_layers=1,
                            key=kp, mxu_dtype=jnp.bfloat16)
    h16 = jax.block_until_ready(model_bf16.forward(x))
    w_ih_p, w_hh_p, bias_p = model_bf16.params[0]
    h16_ref, _, _ = _lstm_layer_ref(x, w_ih_p, w_hh_p, bias_p, zeros, zeros,
                                    hidden_size=hidden_size, out_dtype=jnp.bfloat16)
    assert jnp.allclose(h16.astype(jnp.float32), h16_ref.astype(jnp.float32),
                        atol=2e-2, rtol=2e-2)

    print("KERNEL_OK")
</pallas_src>

<mosaic_0001>
module attributes {stable_mosaic.version = 11 : i64} {
  func.func @_lstm_fused_chunk_kernel(%arg0: i32, %arg1: memref<64x16xf32, #tpu.memory_space<vmem>>, %arg2: memref<1x512xf32, #tpu.memory_space<vmem>>, %arg3: memref<8x128xf32, #tpu.memory_space<vmem>>, %arg4: memref<8x128xf32, #tpu.memory_space<vmem>>, %arg5: memref<16x512xf32, #tpu.memory_space<any>>, %arg6: memref<128x512xf32, #tpu.memory_space<any>>, %arg7: memref<64x128xf32, #tpu.memory_space<vmem>>, %arg8: memref<8x128xf32, #tpu.memory_space<vmem>>, %arg9: memref<8x128xf32, #tpu.memory_space<vmem>>, %arg10: memref<16x512xf32, #tpu.memory_space<vmem>>, %arg11: memref<128x512xf32, #tpu.memory_space<vmem>>, %arg12: memref<64x512xf32, #tpu.memory_space<vmem>>, %arg13: memref<8x128xf32, #tpu.memory_space<vmem>>, %arg14: memref<8x128xf32, #tpu.memory_space<vmem>>, %arg15: memref<2x!tpu.dma_semaphore, #tpu.memory_space<semaphore_mem>>) attributes {dimension_semantics = [#tpu.dimension_semantics<arbitrary>], iteration_bounds = array<i64: 1>, scalar_prefetch = 0 : i64, scratch_operands = 6 : i64, tpu.core_type = #tpu.core_type<tc>, window_params = [{transform_indices = @transform_0, window_bounds = array<i64: 64, 16>}, {pipeline_mode = #tpu.pipeline_mode<synchronous>, transform_indices = @transform_1, window_bounds = array<i64: 1, 512>}, {pipeline_mode = #tpu.pipeline_mode<synchronous>, transform_indices = @transform_2, window_bounds = array<i64: 8, 128>}, {pipeline_mode = #tpu.pipeline_mode<synchronous>, transform_indices = @transform_3, window_bounds = array<i64: 8, 128>}, {}, {}, {transform_indices = @transform_6, window_bounds = array<i64: 64, 128>}, {pipeline_mode = #tpu.pipeline_mode<synchronous>, transform_indices = @transform_7, window_bounds = array<i64: 8, 128>}, {pipeline_mode = #tpu.pipeline_mode<synchronous>, transform_indices = @transform_8, window_bounds = array<i64: 8, 128>}]} {
    %c0_i32 = arith.constant 0 : i32
    %0 = arith.cmpi eq, %arg0, %c0_i32 : i32
    %1 = arith.extui %0 : i1 to i32
    %c0_i32_0 = arith.constant 0 : i32
    %2 = arith.cmpi ne, %1, %c0_i32_0 : i32
    scf.if %2 {
      %c0_i32_79 = arith.constant 0 : i32
      %281 = tpu.memref_slice %arg15[%c0_i32_79] : memref<2x!tpu.dma_semaphore, #tpu.memory_space<semaphore_mem>> -> memref<1x!tpu.dma_semaphore, #tpu.memory_space<semaphore_mem>>
      %282 = tpu.memref_squeeze %281 : memref<1x!tpu.dma_semaphore, #tpu.memory_space<semaphore_mem>> -> memref<!tpu.dma_semaphore, #tpu.memory_space<semaphore_mem>>
      tpu.enqueue_dma source(%arg5 : memref<16x512xf32, #tpu.memory_space<any>>) target(%arg10 : memref<16x512xf32, #tpu.memory_space<vmem>>) target_semaphore(%282 : memref<!tpu.dma_semaphore, #tpu.memory_space<semaphore_mem>>)
      %c1_i32_80 = arith.constant 1 : i32
      %283 = tpu.memref_slice %arg15[%c1_i32_80] : memref<2x!tpu.dma_semaphore, #tpu.memory_space<semaphore_mem>> -> memref<1x!tpu.dma_semaphore, #tpu.memory_space<semaphore_mem>>
      %284 = tpu.memref_squeeze %283 : memref<1x!tpu.dma_semaphore, #tpu.memory_space<semaphore_mem>> -> memref<!tpu.dma_semaphore, #tpu.memory_space<semaphore_mem>>
      tpu.enqueue_dma source(%arg6 : memref<128x512xf32, #tpu.memory_space<any>>) target(%arg11 : memref<128x512xf32, #tpu.memory_space<vmem>>) target_semaphore(%284 : memref<!tpu.dma_semaphore, #tpu.memory_space<semaphore_mem>>)
      %c0_i32_81 = arith.constant 0 : i32
      %285 = tpu.memref_slice %arg15[%c0_i32_81] : memref<2x!tpu.dma_semaphore, #tpu.memory_space<semaphore_mem>> -> memref<1x!tpu.dma_semaphore, #tpu.memory_space<semaphore_mem>>
      %286 = tpu.memref_squeeze %285 : memref<1x!tpu.dma_semaphore, #tpu.memory_space<semaphore_mem>> -> memref<!tpu.dma_semaphore, #tpu.memory_space<semaphore_mem>>
      tpu.wait_dma2 semaphore(%286 : memref<!tpu.dma_semaphore, #tpu.memory_space<semaphore_mem>>) src(%arg5 : memref<16x512xf32, #tpu.memory_space<any>>) dst(%arg10 : memref<16x512xf32, #tpu.memory_space<vmem>>)
      %c1_i32_82 = arith.constant 1 : i32
      %287 = tpu.memref_slice %arg15[%c1_i32_82] : memref<2x!tpu.dma_semaphore, #tpu.memory_space<semaphore_mem>> -> memref<1x!tpu.dma_semaphore, #tpu.memory_space<semaphore_mem>>
      %288 = tpu.memref_squeeze %287 : memref<1x!tpu.dma_semaphore, #tpu.memory_space<semaphore_mem>> -> memref<!tpu.dma_semaphore, #tpu.memory_space<semaphore_mem>>
      tpu.wait_dma2 semaphore(%288 : memref<!tpu.dma_semaphore, #tpu.memory_space<semaphore_mem>>) src(%arg6 : memref<128x512xf32, #tpu.memory_space<any>>) dst(%arg11 : memref<128x512xf32, #tpu.memory_space<vmem>>)
      %c0_83 = arith.constant 0 : index
      %c0_84 = arith.constant 0 : index
      %289 = vector.load %arg3[%c0_83, %c0_84] : memref<8x128xf32, #tpu.memory_space<vmem>>, vector<8x128xf32>
      %c0_85 = arith.constant 0 : index
      %c0_86 = arith.constant 0 : index
      %290 = vector.load %arg13[%c0_85, %c0_86] : memref<8x128xf32, #tpu.memory_space<vmem>>, vector<8x128xf32>
      tpu.vector_store %arg13[%c0_85, %c0_86], %289 {strides = array<i32>} : memref<8x128xf32, #tpu.memory_space<vmem>>, vector<8x128xf32>,
      %c0_87 = arith.constant 0 : index
      %c0_88 = arith.constant 0 : index
      %291 = vector.load %arg4[%c0_87, %c0_88] : memref<8x128xf32, #tpu.memory_space<vmem>>, vector<8x128xf32>
      %c0_89 = arith.constant 0 : index
      %c0_90 = arith.constant 0 : index
      %292 = vector.load %arg14[%c0_89, %c0_90] : memref<8x128xf32, #tpu.memory_space<vmem>>, vector<8x128xf32>
      tpu.vector_store %arg14[%c0_89, %c0_90], %291 {strides = array<i32>} : memref<8x128xf32, #tpu.memory_space<vmem>>, vector<8x128xf32>,
    } else {
    }
    %c0 = arith.constant 0 : index
    %c0_1 = arith.constant 0 : index
    %3 = vector.load %arg10[%c0, %c0_1] : memref<16x512xf32, #tpu.memory_space<vmem>>, vector<16x512xf32>
    %c0_2 = arith.constant 0 : index
    %c0_3 = arith.constant 0 : index
    %4 = vector.load %arg11[%c0_2, %c0_3] : memref<128x512xf32, #tpu.memory_space<vmem>>, vector<128x512xf32>
    %c0_4 = arith.constant 0 : index
    %c0_5 = arith.constant 0 : index
    %5 = vector.load %arg1[%c0_4, %c0_5] : memref<64x16xf32, #tpu.memory_space<vmem>>, vector<64x16xf32>
    %cst = arith.constant dense<0.000000e+00> : vector<64x512xf32>
    %6 = tpu.matmul %5, %3, %cst {dimension_numbers = #tpu.dot_dimension_numbers<[1], [0], [0], [1], [0, 0, 1, 1], [], []>} : vector<64x16xf32>, vector<16x512xf32>, vector<64x512xf32> -> vector<64x512xf32>
    %c0_6 = arith.constant 0 : index
    %c0_7 = arith.constant 0 : index
    %7 = vector.load %arg2[%c0_6, %c0_7] : memref<1x512xf32, #tpu.memory_space<vmem>>, vector<1x512xf32>
    %8 = vector.broadcast %7 : vector<1x512xf32> to vector<64x512xf32>
    %9 = arith.addf %6, %8 : vector<64x512xf32>
    %c0_8 = arith.constant 0 : index
    %c0_9 = arith.constant 0 : index
    %10 = vector.load %arg12[%c0_8, %c0_9] : memref<64x512xf32, #tpu.memory_space<vmem>>, vector<64x512xf32>
    tpu.vector_store %arg12[%c0_8, %c0_9], %9 {strides = array<i32>} : memref<64x512xf32, #tpu.memory_space<vmem>>, vector<64x512xf32>,
    %c0_10 = arith.constant 0 : index
    %c0_11 = arith.constant 0 : index
    %11 = vector.load %arg13[%c0_10, %c0_11] : memref<8x128xf32, #tpu.memory_space<vmem>>, vector<8x128xf32>
    %c0_12 = arith.constant 0 : index
    %c0_13 = arith.constant 0 : index
    %12 = vector.load %arg14[%c0_12, %c0_13] : memref<8x128xf32, #tpu.memory_space<vmem>>, vector<8x128xf32>
    %c0_i32_14 = arith.constant 0 : i32
    %c8_i32 = arith.constant 8 : i32
    %13 = arith.muli %c0_i32_14, %c8_i32 : i32
    %14 = tpu.assume_multiple %13, 8 : i32
    %15 = arith.index_cast %14 : i32 to index
    %c0_15 = arith.constant 0 : index
    %16 = vector.load %arg12[%15, %c0_15] : memref<64x512xf32, #tpu.memory_space<vmem>>, vector<8x512xf32>
    %cst_16 = arith.constant dense<0.000000e+00> : vector<8x512xf32>
    %17 = tpu.matmul %11, %4, %cst_16 {dimension_numbers = #tpu.dot_dimension_numbers<[1], [0], [0], [1], [0, 0, 1, 1], [], []>} : vector<8x128xf32>, vector<128x512xf32>, vector<8x512xf32> -> vector<8x512xf32>
    %18 = arith.addf %17, %16 : vector<8x512xf32>
    %19 = vector.extract_strided_slice %18 {offsets = [0, 0], sizes = [8, 128], strides = [1, 1]} : vector<8x512xf32> to vector<8x128xf32>
    %20 = arith.negf %19 : vector<8x128xf32>
    %21 = math.exp %20 : vector<8x128xf32>
    %cst_17 = arith.constant 1.000000e+00 : f32
    %22 = vector.broadcast %cst_17 : f32 to vector<8x128xf32>
    %23 = arith.addf %22, %21 : vector<8x128xf32>
    %24 = arith.divf %22, %23 : vector<8x128xf32>
    %25 = vector.extract_strided_slice %18 {offsets = [0, 128], sizes = [8, 128], strides = [1, 1]} : vector<8x512xf32> to vector<8x128xf32>
    %26 = arith.negf %25 : vector<8x128xf32>
    %27 = math.exp %26 : vector<8x128xf32>
    %cst_18 = arith.constant 1.000000e+00 : f32
    %28 = vector.broadcast %cst_18 : f32 to vector<8x128xf32>
    %29 = arith.addf %28, %27 : vector<8x128xf32>
    %30 = arith.divf %28, %29 : vector<8x128xf32>
    %31 = vector.extract_strided_slice %18 {offsets = [0, 256], sizes = [8, 128], strides = [1, 1]} : vector<8x512xf32> to vector<8x128xf32>
    %32 = math.tanh %31 : vector<8x128xf32>
    %33 = vector.extract_strided_slice %18 {offsets = [0, 384], sizes = [8, 128], strides = [1, 1]} : vector<8x512xf32> to vector<8x128xf32>
    %34 = arith.negf %33 : vector<8x128xf32>
    %35 = math.exp %34 : vector<8x128xf32>
    %cst_19 = arith.constant 1.000000e+00 : f32
    %36 = vector.broadcast %cst_19 : f32 to vector<8x128xf32>
    %37 = arith.addf %36, %35 : vector<8x128xf32>
    %38 = arith.divf %36, %37 : vector<8x128xf32>
    %39 = arith.mulf %30, %12 : vector<8x128xf32>
    %40 = arith.mulf %24, %32 : vector<8x128xf32>
    %41 = arith.addf %39, %40 : vector<8x128xf32>
    %42 = math.tanh %41 : vector<8x128xf32>
    %43 = arith.mulf %38, %42 : vector<8x128xf32>
    %44 = arith.index_cast %14 : i32 to index
    %c0_20 = arith.constant 0 : index
    %45 = vector.load %arg7[%44, %c0_20] : memref<64x128xf32, #tpu.memory_space<vmem>>, vector<8x128xf32>
    tpu.vector_store %arg7[%44, %c0_20], %43 {strides = array<i32>} : memref<64x128xf32, #tpu.memory_space<vmem>>, vector<8x128xf32>,
    %c1_i32 = arith.constant 1 : i32
    %c8_i32_21 = arith.constant 8 : i32
    %46 = arith.muli %c1_i32, %c8_i32_21 : i32
    %47 = tpu.assume_multiple %46, 8 : i32
    %48 = arith.index_cast %47 : i32 to index
    %c0_22 = arith.constant 0 : index
    %49 = vector.load %arg12[%48, %c0_22] : memref<64x512xf32, #tpu.memory_space<vmem>>, vector<8x512xf32>
    %cst_23 = arith.constant dense<0.000000e+00> : vector<8x512xf32>
    %50 = tpu.matmul %43, %4, %cst_23 {dimension_numbers = #tpu.dot_dimension_numbers<[1], [0], [0], [1], [0, 0, 1, 1], [], []>} : vector<8x128xf32>, vector<128x512xf32>, vector<8x512xf32> -> vector<8x512xf32>
    %51 = arith.addf %50, %49 : vector<8x512xf32>
    %52 = vector.extract_strided_slice %51 {offsets = [0, 0], sizes = [8, 128], strides = [1, 1]} : vector<8x512xf32> to vector<8x128xf32>
    %53 = arith.negf %52 : vector<8x128xf32>
    %54 = math.exp %53 : vector<8x128xf32>
    %cst_24 = arith.constant 1.000000e+00 : f32
    %55 = vector.broadcast %cst_24 : f32 to vector<8x128xf32>
    %56 = arith.addf %55, %54 : vector<8x128xf32>
    %57 = arith.divf %55, %56 : vector<8x128xf32>
    %58 = vector.extract_strided_slice %51 {offsets = [0, 128], sizes = [8, 128], strides = [1, 1]} : vector<8x512xf32> to vector<8x128xf32>
    %59 = arith.negf %58 : vector<8x128xf32>
    %60 = math.exp %59 : vector<8x128xf32>
    %cst_25 = arith.constant 1.000000e+00 : f32
    %61 = vector.broadcast %cst_25 : f32 to vector<8x128xf32>
    %62 = arith.addf %61, %60 : vector<8x128xf32>
    %63 = arith.divf %61, %62 : vector<8x128xf32>
    %64 = vector.extract_strided_slice %51 {offsets = [0, 256], sizes = [8, 128], strides = [1, 1]} : vector<8x512xf32> to vector<8x128xf32>
    %65 = math.tanh %64 : vector<8x128xf32>
    %66 = vector.extract_strided_slice %51 {offsets = [0, 384], sizes = [8, 128], strides = [1, 1]} : vector<8x512xf32> to vector<8x128xf32>
    %67 = arith.negf %66 : vector<8x128xf32>
    %68 = math.exp %67 : vector<8x128xf32>
    %cst_26 = arith.constant 1.000000e+00 : f32
    %69 = vector.broadcast %cst_26 : f32 to vector<8x128xf32>
    %70 = arith.addf %69, %68 : vector<8x128xf32>
    %71 = arith.divf %69, %70 : vector<8x128xf32>
    %72 = arith.mulf %63, %41 : vector<8x128xf32>
    %73 = arith.mulf %57, %65 : vector<8x128xf32>
    %74 = arith.addf %72, %73 : vector<8x128xf32>
    %75 = math.tanh %74 : vector<8x128xf32>
    %76 = arith.mulf %71, %75 : vector<8x128xf32>
    %77 = arith.index_cast %47 : i32 to index
    %c0_27 = arith.constant 0 : index
    %78 = vector.load %arg7[%77, %c0_27] : memref<64x128xf32, #tpu.memory_space<vmem>>, vector<8x128xf32>
    tpu.vector_store %arg7[%77, %c0_27], %76 {strides = array<i32>} : memref<64x128xf32, #tpu.memory_space<vmem>>, vector<8x128xf32>,
    %c2_i32 = arith.constant 2 : i32
    %c8_i32_28 = arith.constant 8 : i32
    %79 = arith.muli %c2_i32, %c8_i32_28 : i32
    %80 = tpu.assume_multiple %79, 8 : i32
    %81 = arith.index_cast %80 : i32 to index
    %c0_29 = arith.constant 0 : index
    %82 = vector.load %arg12[%81, %c0_29] : memref<64x512xf32, #tpu.memory_space<vmem>>, vector<8x512xf32>
    %cst_30 = arith.constant dense<0.000000e+00> : vector<8x512xf32>
    %83 = tpu.matmul %76, %4, %cst_30 {dimension_numbers = #tpu.dot_dimension_numbers<[1], [0], [0], [1], [0, 0, 1, 1], [], []>} : vector<8x128xf32>, vector<128x512xf32>, vector<8x512xf32> -> vector<8x512xf32>
    %84 = arith.addf %83, %82 : vector<8x512xf32>
    %85 = vector.extract_strided_slice %84 {offsets = [0, 0], sizes = [8, 128], strides = [1, 1]} : vector<8x512xf32> to vector<8x128xf32>
    %86 = arith.negf %85 : vector<8x128xf32>
    %87 = math.exp %86 : vector<8x128xf32>
    %cst_31 = arith.constant 1.000000e+00 : f32
    %88 = vector.broadcast %cst_31 : f32 to vector<8x128xf32>
    %89 = arith.addf %88, %87 : vector<8x128xf32>
    %90 = arith.divf %88, %89 : vector<8x128xf32>
    %91 = vector.extract_strided_slice %84 {offsets = [0, 128], sizes = [8, 128], strides = [1, 1]} : vector<8x512xf32> to vector<8x128xf32>
    %92 = arith.negf %91 : vector<8x128xf32>
    %93 = math.exp %92 : vector<8x128xf32>
    %cst_32 = arith.constant 1.000000e+00 : f32
    %94 = vector.broadcast %cst_32 : f32 to vector<8x128xf32>
    %95 = arith.addf %94, %93 : vector<8x128xf32>
    %96 = arith.divf %94, %95 : vector<8x128xf32>
    %97 = vector.extract_strided_slice %84 {offsets = [0, 256], sizes = [8, 128], strides = [1, 1]} : vector<8x512xf32> to vector<8x128xf32>
    %98 = math.tanh %97 : vector<8x128xf32>
    %99 = vector.extract_strided_slice %84 {offsets = [0, 384], sizes = [8, 128], strides = [1, 1]} : vector<8x512xf32> to vector<8x128xf32>
    %100 = arith.negf %99 : vector<8x128xf32>
    %101 = math.exp %100 : vector<8x128xf32>
    %cst_33 = arith.constant 1.000000e+00 : f32
    %102 = vector.broadcast %cst_33 : f32 to vector<8x128xf32>
    %103 = arith.addf %102, %101 : vector<8x128xf32>
    %104 = arith.divf %102, %103 : vector<8x128xf32>
    %105 = arith.mulf %96, %74 : vector<8x128xf32>
    %106 = arith.mulf %90, %98 : vector<8x128xf32>
    %107 = arith.addf %105, %106 : vector<8x128xf32>
    %108 = math.tanh %107 : vector<8x128xf32>
    %109 = arith.mulf %104, %108 : vector<8x128xf32>
    %110 = arith.index_cast %80 : i32 to index
    %c0_34 = arith.constant 0 : index
    %111 = vector.load %arg7[%110, %c0_34] : memref<64x128xf32, #tpu.memory_space<vmem>>, vector<8x128xf32>
    tpu.vector_store %arg7[%110, %c0_34], %109 {strides = array<i32>} : memref<64x128xf32, #tpu.memory_space<vmem>>, vector<8x128xf32>,
    %c3_i32 = arith.constant 3 : i32
    %c8_i32_35 = arith.constant 8 : i32
    %112 = arith.muli %c3_i32, %c8_i32_35 : i32
    %113 = tpu.assume_multiple %112, 8 : i32
    %114 = arith.index_cast %113 : i32 to index
    %c0_36 = arith.constant 0 : index
    %115 = vector.load %arg12[%114, %c0_36] : memref<64x512xf32, #tpu.memory_space<vmem>>, vector<8x512xf32>
    %cst_37 = arith.constant dense<0.000000e+00> : vector<8x512xf32>
    %116 = tpu.matmul %109, %4, %cst_37 {dimension_numbers = #tpu.dot_dimension_numbers<[1], [0], [0], [1], [0, 0, 1, 1], [], []>} : vector<8x128xf32>, vector<128x512xf32>, vector<8x512xf32> -> vector<8x512xf32>
    %117 = arith.addf %116, %115 : vector<8x512xf32>
    %118 = vector.extract_strided_slice %117 {offsets = [0, 0], sizes = [8, 128], strides = [1, 1]} : vector<8x512xf32> to vector<8x128xf32>
    %119 = arith.negf %118 : vector<8x128xf32>
    %120 = math.exp %119 : vector<8x128xf32>
    %cst_38 = arith.constant 1.000000e+00 : f32
    %121 = vector.broadcast %cst_38 : f32 to vector<8x128xf32>
    %122 = arith.addf %121, %120 : vector<8x128xf32>
    %123 = arith.divf %121, %122 : vector<8x128xf32>
    %124 = vector.extract_strided_slice %117 {offsets = [0, 128], sizes = [8, 128], strides = [1, 1]} : vector<8x512xf32> to vector<8x128xf32>
    %125 = arith.negf %124 : vector<8x128xf32>
    %126 = math.exp %125 : vector<8x128xf32>
    %cst_39 = arith.constant 1.000000e+00 : f32
    %127 = vector.broadcast %cst_39 : f32 to vector<8x128xf32>
    %128 = arith.addf %127, %126 : vector<8x128xf32>
    %129 = arith.divf %127, %128 : vector<8x128xf32>
    %130 = vector.extract_strided_slice %117 {offsets = [0, 256], sizes = [8, 128], strides = [1, 1]} : vector<8x512xf32> to vector<8x128xf32>
    %131 = math.tanh %130 : vector<8x128xf32>
    %132 = vector.extract_strided_slice %117 {offsets = [0, 384], sizes = [8, 128], strides = [1, 1]} : vector<8x512xf32> to vector<8x128xf32>
    %133 = arith.negf %132 : vector<8x128xf32>
    %134 = math.exp %133 : vector<8x128xf32>
    %cst_40 = arith.constant 1.000000e+00 : f32
    %135 = vector.broadcast %cst_40 : f32 to vector<8x128xf32>
    %136 = arith.addf %135, %134 : vector<8x128xf32>
    %137 = arith.divf %135, %136 : vector<8x128xf32>
    %138 = arith.mulf %129, %107 : vector<8x128xf32>
    %139 = arith.mulf %123, %131 : vector<8x128xf32>
    %140 = arith.addf %138, %139 : vector<8x128xf32>
    %141 = math.tanh %140 : vector<8x128xf32>
    %142 = arith.mulf %137, %141 : vector<8x128xf32>
    %143 = arith.index_cast %113 : i32 to index
    %c0_41 = arith.constant 0 : index
    %144 = vector.load %arg7[%143, %c0_41] : memref<64x128xf32, #tpu.memory_space<vmem>>, vector<8x128xf32>
    tpu.vector_store %arg7[%143, %c0_41], %142 {strides = array<i32>} : memref<64x128xf32, #tpu.memory_space<vmem>>, vector<8x128xf32>,
    %c4_i32 = arith.constant 4 : i32
    %c8_i32_42 = arith.constant 8 : i32
    %145 = arith.muli %c4_i32, %c8_i32_42 : i32
    %146 = tpu.assume_multiple %145, 8 : i32
    %147 = arith.index_cast %146 : i32 to index
    %c0_43 = arith.constant 0 : index
    %148 = vector.load %arg12[%147, %c0_43] : memref<64x512xf32, #tpu.memory_space<vmem>>, vector<8x512xf32>
    %cst_44 = arith.constant dense<0.000000e+00> : vector<8x512xf32>
    %149 = tpu.matmul %142, %4, %cst_44 {dimension_numbers = #tpu.dot_dimension_numbers<[1], [0], [0], [1], [0, 0, 1, 1], [], []>} : vector<8x128xf32>, vector<128x512xf32>, vector<8x512xf32> -> vector<8x512xf32>
    %150 = arith.addf %149, %148 : vector<8x512xf32>
    %151 = vector.extract_strided_slice %150 {offsets = [0, 0], sizes = [8, 128], strides = [1, 1]} : vector<8x512xf32> to vector<8x128xf32>
    %152 = arith.negf %151 : vector<8x128xf32>
    %153 = math.exp %152 : vector<8x128xf32>
    %cst_45 = arith.constant 1.000000e+00 : f32
    %154 = vector.broadcast %cst_45 : f32 to vector<8x128xf32>
    %155 = arith.addf %154, %153 : vector<8x128xf32>
    %156 = arith.divf %154, %155 : vector<8x128xf32>
    %157 = vector.extract_strided_slice %150 {offsets = [0, 128], sizes = [8, 128], strides = [1, 1]} : vector<8x512xf32> to vector<8x128xf32>
    %158 = arith.negf %157 : vector<8x128xf32>
    %159 = math.exp %158 : vector<8x128xf32>
    %cst_46 = arith.constant 1.000000e+00 : f32
    %160 = vector.broadcast %cst_46 : f32 to vector<8x128xf32>
    %161 = arith.addf %160, %159 : vector<8x128xf32>
    %162 = arith.divf %160, %161 : vector<8x128xf32>
    %163 = vector.extract_strided_slice %150 {offsets = [0, 256], sizes = [8, 128], strides = [1, 1]} : vector<8x512xf32> to vector<8x128xf32>
    %164 = math.tanh %163 : vector<8x128xf32>
    %165 = vector.extract_strided_slice %150 {offsets = [0, 384], sizes = [8, 128], strides = [1, 1]} : vector<8x512xf32> to vector<8x128xf32>
    %166 = arith.negf %165 : vector<8x128xf32>
    %167 = math.exp %166 : vector<8x128xf32>
    %cst_47 = arith.constant 1.000000e+00 : f32
    %168 = vector.broadcast %cst_47 : f32 to vector<8x128xf32>
    %169 = arith.addf %168, %167 : vector<8x128xf32>
    %170 = arith.divf %168, %169 : vector<8x128xf32>
    %171 = arith.mulf %162, %140 : vector<8x128xf32>
    %172 = arith.mulf %156, %164 : vector<8x128xf32>
    %173 = arith.addf %171, %172 : vector<8x128xf32>
    %174 = math.tanh %173 : vector<8x128xf32>
    %175 = arith.mulf %170, %174 : vector<8x128xf32>
    %176 = arith.index_cast %146 : i32 to index
    %c0_48 = arith.constant 0 : index
    %177 = vector.load %arg7[%176, %c0_48] : memref<64x128xf32, #tpu.memory_space<vmem>>, vector<8x128xf32>
    tpu.vector_store %arg7[%176, %c0_48], %175 {strides = array<i32>} : memref<64x128xf32, #tpu.memory_space<vmem>>, vector<8x128xf32>,
    %c5_i32 = arith.constant 5 : i32
    %c8_i32_49 = arith.constant 8 : i32
    %178 = arith.muli %c5_i32, %c8_i32_49 : i32
    %179 = tpu.assume_multiple %178, 8 : i32
    %180 = arith.index_cast %179 : i32 to index
    %c0_50 = arith.constant 0 : index
    %181 = vector.load %arg12[%180, %c0_50] : memref<64x512xf32, #tpu.memory_space<vmem>>, vector<8x512xf32>
    %cst_51 = arith.constant dense<0.000000e+00> : vector<8x512xf32>
    %182 = tpu.matmul %175, %4, %cst_51 {dimension_numbers = #tpu.dot_dimension_numbers<[1], [0], [0], [1], [0, 0, 1, 1], [], []>} : vector<8x128xf32>, vector<128x512xf32>, vector<8x512xf32> -> vector<8x512xf32>
    %183 = arith.addf %182, %181 : vector<8x512xf32>
    %184 = vector.extract_strided_slice %183 {offsets = [0, 0], sizes = [8, 128], strides = [1, 1]} : vector<8x512xf32> to vector<8x128xf32>
    %185 = arith.negf %184 : vector<8x128xf32>
    %186 = math.exp %185 : vector<8x128xf32>
    %cst_52 = arith.constant 1.000000e+00 : f32
    %187 = vector.broadcast %cst_52 : f32 to vector<8x128xf32>
    %188 = arith.addf %187, %186 : vector<8x128xf32>
    %189 = arith.divf %187, %188 : vector<8x128xf32>
    %190 = vector.extract_strided_slice %183 {offsets = [0, 128], sizes = [8, 128], strides = [1, 1]} : vector<8x512xf32> to vector<8x128xf32>
    %191 = arith.negf %190 : vector<8x128xf32>
    %192 = math.exp %191 : vector<8x128xf32>
    %cst_53 = arith.constant 1.000000e+00 : f32
    %193 = vector.broadcast %cst_53 : f32 to vector<8x128xf32>
    %194 = arith.addf %193, %192 : vector<8x128xf32>
    %195 = arith.divf %193, %194 : vector<8x128xf32>
    %196 = vector.extract_strided_slice %183 {offsets = [0, 256], sizes = [8, 128], strides = [1, 1]} : vector<8x512xf32> to vector<8x128xf32>
    %197 = math.tanh %196 : vector<8x128xf32>
    %198 = vector.extract_strided_slice %183 {offsets = [0, 384], sizes = [8, 128], strides = [1, 1]} : vector<8x512xf32> to vector<8x128xf32>
    %199 = arith.negf %198 : vector<8x128xf32>
    %200 = math.exp %199 : vector<8x128xf32>
    %cst_54 = arith.constant 1.000000e+00 : f32
    %201 = vector.broadcast %cst_54 : f32 to vector<8x128xf32>
    %202 = arith.addf %201, %200 : vector<8x128xf32>
    %203 = arith.divf %201, %202 : vector<8x128xf32>
    %204 = arith.mulf %195, %173 : vector<8x128xf32>
    %205 = arith.mulf %189, %197 : vector<8x128xf32>
    %206 = arith.addf %204, %205 : vector<8x128xf32>
    %207 = math.tanh %206 : vector<8x128xf32>
    %208 = arith.mulf %203, %207 : vector<8x128xf32>
    %209 = arith.index_cast %179 : i32 to index
    %c0_55 = arith.constant 0 : index
    %210 = vector.load %arg7[%209, %c0_55] : memref<64x128xf32, #tpu.memory_space<vmem>>, vector<8x128xf32>
    tpu.vector_store %arg7[%209, %c0_55], %208 {strides = array<i32>} : memref<64x128xf32, #tpu.memory_space<vmem>>, vector<8x128xf32>,
    %c6_i32 = arith.constant 6 : i32
    %c8_i32_56 = arith.constant 8 : i32
    %211 = arith.muli %c6_i32, %c8_i32_56 : i32
    %212 = tpu.assume_multiple %211, 8 : i32
    %213 = arith.index_cast %212 : i32 to index
    %c0_57 = arith.constant 0 : index
    %214 = vector.load %arg12[%213, %c0_57] : memref<64x512xf32, #tpu.memory_space<vmem>>, vector<8x512xf32>
    %cst_58 = arith.constant dense<0.000000e+00> : vector<8x512xf32>
    %215 = tpu.matmul %208, %4, %cst_58 {dimension_numbers = #tpu.dot_dimension_numbers<[1], [0], [0], [1], [0, 0, 1, 1], [], []>} : vector<8x128xf32>, vector<128x512xf32>, vector<8x512xf32> -> vector<8x512xf32>
    %216 = arith.addf %215, %214 : vector<8x512xf32>
    %217 = vector.extract_strided_slice %216 {offsets = [0, 0], sizes = [8, 128], strides = [1, 1]} : vector<8x512xf32> to vector<8x128xf32>
    %218 = arith.negf %217 : vector<8x128xf32>
    %219 = math.exp %218 : vector<8x128xf32>
    %cst_59 = arith.constant 1.000000e+00 : f32
    %220 = vector.broadcast %cst_59 : f32 to vector<8x128xf32>
    %221 = arith.addf %220, %219 : vector<8x128xf32>
    %222 = arith.divf %220, %221 : vector<8x128xf32>
    %223 = vector.extract_strided_slice %216 {offsets = [0, 128], sizes = [8, 128], strides = [1, 1]} : vector<8x512xf32> to vector<8x128xf32>
    %224 = arith.negf %223 : vector<8x128xf32>
    %225 = math.exp %224 : vector<8x128xf32>
    %cst_60 = arith.constant 1.000000e+00 : f32
    %226 = vector.broadcast %cst_60 : f32 to vector<8x128xf32>
    %227 = arith.addf %226, %225 : vector<8x128xf32>
    %228 = arith.divf %226, %227 : vector<8x128xf32>
    %229 = vector.extract_strided_slice %216 {offsets = [0, 256], sizes = [8, 128], strides = [1, 1]} : vector<8x512xf32> to vector<8x128xf32>
    %230 = math.tanh %229 : vector<8x128xf32>
    %231 = vector.extract_strided_slice %216 {offsets = [0, 384], sizes = [8, 128], strides = [1, 1]} : vector<8x512xf32> to vector<8x128xf32>
    %232 = arith.negf %231 : vector<8x128xf32>
    %233 = math.exp %232 : vector<8x128xf32>
    %cst_61 = arith.constant 1.000000e+00 : f32
    %234 = vector.broadcast %cst_61 : f32 to vector<8x128xf32>
    %235 = arith.addf %234, %233 : vector<8x128xf32>
    %236 = arith.divf %234, %235 : vector<8x128xf32>
    %237 = arith.mulf %228, %206 : vector<8x128xf32>
    %238 = arith.mulf %222, %230 : vector<8x128xf32>
    %239 = arith.addf %237, %238 : vector<8x128xf32>
    %240 = math.tanh %239 : vector<8x128xf32>
    %241 = arith.mulf %236, %240 : vector<8x128xf32>
    %242 = arith.index_cast %212 : i32 to index
    %c0_62 = arith.constant 0 : index
    %243 = vector.load %arg7[%242, %c0_62] : memref<64x128xf32, #tpu.memory_space<vmem>>, vector<8x128xf32>
    tpu.vector_store %arg7[%242, %c0_62], %241 {strides = array<i32>} : memref<64x128xf32, #tpu.memory_space<vmem>>, vector<8x128xf32>,
    %c7_i32 = arith.constant 7 : i32
    %c8_i32_63 = arith.constant 8 : i32
    %244 = arith.muli %c7_i32, %c8_i32_63 : i32
    %245 = tpu.assume_multiple %244, 8 : i32
    %246 = arith.index_cast %245 : i32 to index
    %c0_64 = arith.constant 0 : index
    %247 = vector.load %arg12[%246, %c0_64] : memref<64x512xf32, #tpu.memory_space<vmem>>, vector<8x512xf32>
    %cst_65 = arith.constant dense<0.000000e+00> : vector<8x512xf32>
    %248 = tpu.matmul %241, %4, %cst_65 {dimension_numbers = #tpu.dot_dimension_numbers<[1], [0], [0], [1], [0, 0, 1, 1], [], []>} : vector<8x128xf32>, vector<128x512xf32>, vector<8x512xf32> -> vector<8x512xf32>
    %249 = arith.addf %248, %247 : vector<8x512xf32>
    %250 = vector.extract_strided_slice %249 {offsets = [0, 0], sizes = [8, 128], strides = [1, 1]} : vector<8x512xf32> to vector<8x128xf32>
    %251 = arith.negf %250 : vector<8x128xf32>
    %252 = math.exp %251 : vector<8x128xf32>
    %cst_66 = arith.constant 1.000000e+00 : f32
    %253 = vector.broadcast %cst_66 : f32 to vector<8x128xf32>
    %254 = arith.addf %253, %252 : vector<8x128xf32>
    %255 = arith.divf %253, %254 : vector<8x128xf32>
    %256 = vector.extract_strided_slice %249 {offsets = [0, 128], sizes = [8, 128], strides = [1, 1]} : vector<8x512xf32> to vector<8x128xf32>
    %257 = arith.negf %256 : vector<8x128xf32>
    %258 = math.exp %257 : vector<8x128xf32>
    %cst_67 = arith.constant 1.000000e+00 : f32
    %259 = vector.broadcast %cst_67 : f32 to vector<8x128xf32>
    %260 = arith.addf %259, %258 : vector<8x128xf32>
    %261 = arith.divf %259, %260 : vector<8x128xf32>
    %262 = vector.extract_strided_slice %249 {offsets = [0, 256], sizes = [8, 128], strides = [1, 1]} : vector<8x512xf32> to vector<8x128xf32>
    %263 = math.tanh %262 : vector<8x128xf32>
    %264 = vector.extract_strided_slice %249 {offsets = [0, 384], sizes = [8, 128], strides = [1, 1]} : vector<8x512xf32> to vector<8x128xf32>
    %265 = arith.negf %264 : vector<8x128xf32>
    %266 = math.exp %265 : vector<8x128xf32>
    %cst_68 = arith.constant 1.000000e+00 : f32
    %267 = vector.broadcast %cst_68 : f32 to vector<8x128xf32>
    %268 = arith.addf %267, %266 : vector<8x128xf32>
    %269 = arith.divf %267, %268 : vector<8x128xf32>
    %270 = arith.mulf %261, %239 : vector<8x128xf32>
    %271 = arith.mulf %255, %263 : vector<8x128xf32>
    %272 = arith.addf %270, %271 : vector<8x128xf32>
    %273 = math.tanh %272 : vector<8x128xf32>
    %274 = arith.mulf %269, %273 : vector<8x128xf32>
    %275 = arith.index_cast %245 : i32 to index
    %c0_69 = arith.constant 0 : index
    %276 = vector.load %arg7[%275, %c0_69] : memref<64x128xf32, #tpu.memory_space<vmem>>, vector<8x128xf32>
    tpu.vector_store %arg7[%275, %c0_69], %274 {strides = array<i32>} : memref<64x128xf32, #tpu.memory_space<vmem>>, vector<8x128xf32>,
    %c8_i32_70 = arith.constant 8 : i32
    %c0_71 = arith.constant 0 : index
    %c0_72 = arith.constant 0 : index
    %277 = vector.load %arg13[%c0_71, %c0_72] : memref<8x128xf32, #tpu.memory_space<vmem>>, vector<8x128xf32>
    tpu.vector_store %arg13[%c0_71, %c0_72], %274 {strides = array<i32>} : memref<8x128xf32, #tpu.memory_space<vmem>>, vector<8x128xf32>,
    %c0_73 = arith.constant 0 : index
    %c0_74 = arith.constant 0 : index
    %278 = vector.load %arg14[%c0_73, %c0_74] : memref<8x128xf32, #tpu.memory_space<vmem>>, vector<8x128xf32>
    tpu.vector_store %arg14[%c0_73, %c0_74], %272 {strides = array<i32>} : memref<8x128xf32, #tpu.memory_space<vmem>>, vector<8x128xf32>,
    %c0_75 = arith.constant 0 : index
    %c0_76 = arith.constant 0 : index
    %279 = vector.load %arg8[%c0_75, %c0_76] : memref<8x128xf32, #tpu.memory_space<vmem>>, vector<8x128xf32>
    tpu.vector_store %arg8[%c0_75, %c0_76], %274 {strides = array<i32>} : memref<8x128xf32, #tpu.memory_space<vmem>>, vector<8x128xf32>,
    %c0_77 = arith.constant 0 : index
    %c0_78 = arith.constant 0 : index
    %280 = vector.load %arg9[%c0_77, %c0_78] : memref<8x128xf32, #tpu.memory_space<vmem>>, vector<8x128xf32>
    tpu.vector_store %arg9[%c0_77, %c0_78], %272 {strides = array<i32>} : memref<8x128xf32, #tpu.memory_space<vmem>>, vector<8x128xf32>,
    return
  }
  func.func @transform_0(%arg0: i32) -> (i32, i32) {
    %c0_i32 = arith.constant 0 : i32
    %c0_i32_0 = arith.constant 0 : i32
    return %arg0, %c0_i32 : i32, i32
  }
  func.func @transform_1(%arg0: i32) -> (i32, i32) {
    %c0_i32 = arith.constant 0 : i32
    %c0_i32_0 = arith.constant 0 : i32
    %c0_i32_1 = arith.constant 0 : i32
    return %c0_i32, %c0_i32_0 : i32, i32
  }
  func.func @transform_2(%arg0: i32) -> (i32, i32) {
    %c0_i32 = arith.constant 0 : i32
    %c0_i32_0 = arith.constant 0 : i32
    %c0_i32_1 = arith.constant 0 : i32
    return %c0_i32, %c0_i32_0 : i32, i32
  }
  func.func @transform_3(%arg0: i32) -> (i32, i32) {
    %c0_i32 = arith.constant 0 : i32
    %c0_i32_0 = arith.constant 0 : i32
    %c0_i32_1 = arith.constant 0 : i32
    return %c0_i32, %c0_i32_0 : i32, i32
  }
  func.func @transform_6(%arg0: i32) -> (i32, i32) {
    %c0_i32 = arith.constant 0 : i32
    %c0_i32_0 = arith.constant 0 : i32
    return %arg0, %c0_i32 : i32, i32
  }
  func.func @transform_7(%arg0: i32) -> (i32, i32) {
    %c0_i32 = arith.constant 0 : i32
    %c0_i32_0 = arith.constant 0 : i32
    %c0_i32_1 = arith.constant 0 : i32
    return %c0_i32, %c0_i32_0 : i32, i32
  }
  func.func @transform_8(%arg0: i32) -> (i32, i32) {
    %c0_i32 = arith.constant 0 : i32
    %c0_i32_0 = arith.constant 0 : i32
    %c0_i32_1 = arith.constant 0 : i32
    return %c0_i32, %c0_i32_0 : i32, i32
  }
}

</mosaic_0001>

<bundles_post_ra>
// kernel: tpu_custom_call.1
= control target key start
LH: loop header
LB: loop body
LE: loop exit
PB: predicated region body
PF: predicated region fallthrough
CT: control target
= control target key end

     0   :  { %14 = vsyncpa [#allocation9], 0  ;;  %s3376_s0 = inlined_call_operand.vmem [shape: f32[64,16], index: 0, kind: input, shape index: {}]   ;;  %s3377_s1 = inlined_call_operand.vmem [shape: f32[1,512], index: 1, kind: input, shape index: {}]   ;;  %s3378_s2 = inlined_call_operand.vmem [shape: f32[8,128], index: 2, kind: input, shape index: {}]   ;;  %s3379_s3 = inlined_call_operand.vmem [shape: f32[8,128], index: 3, kind: input, shape index: {}]   ;;  %s3380_s4 = inlined_call_operand.vmem [shape: f32[16,512], index: 4, kind: input, shape index: {}]   ;;  %s3381_s5 = inlined_call_operand.hbm [shape: f32[128,512], index: 5, kind: input, shape index: {}]   ;;  %s3382_s6 = inlined_call_operand.hbm [shape: f32[64,128], index: 6, kind: output, shape index: {0}]   ;;  %s3383_s7 = inlined_call_operand.hbm [shape: f32[8,128], index: 7, kind: output, shape index: {1}]   ;;  %s3384_s8 = inlined_call_operand.hbm [shape: f32[8,128], index: 8, kind: output, shape index: {2}]  }
   0x1   :  { %15 = vsyncpa [#allocation11], 0  ;;  %v61_v0 = vld [vmem:[%s3380_s4] sm:$0xff]  ;;  %v63_v1 = vld [vmem:[%s3380_s4 + $0x8] sm:$0xff] }
   0x2   :  { %v65_v2 = vld [vmem:[%s3380_s4 + $0x10] sm:$0xff]  ;;  %v67_v3 = vld [vmem:[%s3380_s4 + $0x18] sm:$0xff]  ;;  %v69_v4 = vld [vmem:[%s3380_s4 + $0x20] sm:$0xff] }
   0x3   :  { %v71_v5 = vld [vmem:[%s3380_s4 + $0x28] sm:$0xff]  ;;  %v73_v6 = vld [vmem:[%s3380_s4 + $0x30] sm:$0xff]  ;;  %v75_v7 = vld [vmem:[%s3380_s4 + $0x38] sm:$0xff] }
   0x4   :  { %84 = vsyncadd [#allocation7], 1024  ;;  %s2299_s21 = smov [#allocation3]  }
   0x5   :  { %s93_s22 = sshll.u32 %s2299_s21, 4  ;;  %s94_s22 = int_to_ptr.vmem [resolvable:$true] %s93_s22 }
   0x6   :  { %s2219_s23 = scalar_lea.vmem %s94_s22, 8192  ;;  %p2224_p1 = scmp.lt.s32.totalorder %s94_s22, %s94_s22 }
   0x7   :  { %p2220_p0 = scmp.ne.s32.totalorder %s94_s22, %s2219_s23  ;;  %p2225_p2 = scmp.lt.s32.totalorder %s2219_s23, %s2219_s23 }
   0x9   :  { %p2226_p3 = por %p2225_p2, %p2224_p1 }
   0xb   :  { %p2227_p4 = pnand %p2226_p3, %p2220_p0 }
   0xd   :  { %2230 = shalt.err (!%p2227_p4)  }
   0xe   :  { %96 = dma.hbm_to_vmem [thread:$0]  %s3381_s5, 8192, %s94_s22, [#allocation7 + $0x1] }
   0xf   :  { %2291 = dma.done.wait [#allocation7], 1024 }
  0x10   :  { %2292 = vsyncadd [#allocation7], 4294966272 }
  0x11   :  { %2293 = dma.done.wait [#allocation7 + $0x1], 8192 }
  0x12   :  { %2294 = vsyncadd [#allocation7 + $0x1], 4294959104  ;;  %264 = vmatprep.subr.mxu0 %v71_v5  ;;  %377 = vmatprep.subr.mxu1 %v75_v7  ;;  %v3385_v8 = vmov 0.0   ;;  %vm211_vm0 = vcmask 130048   ;;  %v181_v9 = vld [vmem:[%s3376_s0] sm:$0xff]  ;;  %v2383_v10 = vld [vmem:[#allocation3 + $0x1e8] sm:$0xff] }
  0x13   :  { %265 = vmatpush1.msra.mxu0 %v69_v4  ;;  %378 = vmatpush1.msra.mxu1 %v73_v6  ;;  %3473 = vst [vmem:[#allocation22_spill] sm:$0xff] %v2383_v10  ;;  %v2385_v11 = vld [vmem:[#allocation3 + $0x1f8] sm:$0xff]  ;;  %v2389_v12 = vld [vmem:[#allocation3 + $0x1e0] sm:$0xff]  ;;  %v2391_v13 = vld [vmem:[#allocation3 + $0x1f0] sm:$0xff]  ;;  %s2302_s22 = smov [#allocation8]   ;;  %s2303_s24 = smov [#allocation12]  }
  0x14   :  { %266 = vmatprep.subr.mxu0 %v63_v1  ;;  %379 = vmatprep.subr.mxu1 %v67_v3  ;;  %3474 = vst [vmem:[#allocation23_spill] sm:$0xff] %v2385_v11  ;;  %v2393_v14 = vld [vmem:[#allocation3 + $0x1c8] sm:$0xff]  ;;  %v2397_v15 = vld [vmem:[#allocation3 + $0x1d8] sm:$0xff]  ;;  %v2401_v16 = vld [vmem:[#allocation3 + $0x1c0] sm:$0xff]  ;;  %s1904_s23 = sshll.u32 %s2302_s22, 4  ;;  %s1927_s25 = sshll.u32 %s2303_s24, 4  ;;  %s1905_s23 = int_to_ptr.vmem [resolvable:$true] %s1904_s23  ;;  %s1928_s25 = int_to_ptr.vmem [resolvable:$true] %s1927_s25 }
  0x15   :  { %267 = vmatpush1.msra.mxu0 %v61_v0  ;;  %300 = vmatprep.mubr.f32.mxu0 %v3385_v8  ;;  %v2403_v17 = vld [vmem:[#allocation3 + $0x1d0] sm:$0xff]  ;;  %v182_v18 = vld [vmem:[%s3376_s0 + $0x8] sm:$0xff]  ;;  %v2414_v20 = vld [vmem:[#allocation3 + $0x1b8] sm:$0xff] }
  0x16   :  { %380 = vmatpush1.msra.mxu1 %v65_v2  ;;  %413 = vmatprep.mubr.f32.mxu1 %v3385_v8  ;;  %v2412_v19 = vld [vmem:[#allocation3 + $0x1a8] sm:$0xff]  ;;  %v2418_v21 = vld [vmem:[#allocation3 + $0x1a0] sm:$0xff]  ;;  %v2420_v22 = vld [vmem:[#allocation3 + $0x1b0] sm:$0xff] }
  0x17   :  { %1970 = vmatmul.mubr.msk.f32.vlgmr.msra.gmra.mxu0 %vm211_vm0, %v181_v9  ;;  %1978 = vmatmul.mubr.msk.f32.vlgmr.msra.gmra.mxu1 %vm211_vm0, %v181_v9  ;;  %v2424_v23 = vld [vmem:[#allocation3 + $0x188] sm:$0xff]  ;;  %v2426_v24 = vld [vmem:[#allocation3 + $0x198] sm:$0xff]  ;;  %v2432_v25 = vld [vmem:[#allocation3 + $0x180] sm:$0xff] }
  0x18   :  { %503 = vmatprep.subr.mxu0 %v2383_v10  ;;  %574 = vmatprep.subr.mxu1 %v2385_v11  ;;  %v2434_v26 = vld [vmem:[#allocation3 + $0x190] sm:$0xff]  ;;  %v2443_v28 = vld [vmem:[#allocation3 + $0x168] sm:$0xff]  ;;  %v2445_v29 = vld [vmem:[#allocation3 + $0x178] sm:$0xff] }
  0x19   :  { %504 = vmatpush1.msra.mxu0 %v2389_v12  ;;  %575 = vmatpush1.msra.mxu1 %v2391_v13  ;;  %v183_v27 = vld [vmem:[%s3376_s0 + $0x10] sm:$0xff]  ;;  %v2449_v30 = vld [vmem:[#allocation3 + $0x160] sm:$0xff]  ;;  %v2455_v32 = vld [vmem:[#allocation3 + $0x148] sm:$0xff] }
  0x1a   :  { %505 = vmatprep.subr.mxu0 %v2393_v14  ;;  %576 = vmatprep.subr.mxu1 %v2397_v15  ;;  %v2451_v31 = vld [vmem:[#allocation3 + $0x170] sm:$0xff]  ;;  %v2457_v33 = vld [vmem:[#allocation3 + $0x158] sm:$0xff]  ;;  %v2463_v34 = vld [vmem:[#allocation3 + $0x140] sm:$0xff] }
  0x1b   :  { %306 = vmatprep.mubr.f32.mxu0 %v3385_v8  ;;  %419 = vmatprep.mubr.f32.mxu1 %v3385_v8  ;;  %v2465_v35 = vld [vmem:[#allocation3 + $0x150] sm:$0xff]  ;;  %v184_v36 = vld [vmem:[%s3376_s0 + $0x18] sm:$0xff]  ;;  %v2474_v37 = vld [vmem:[#allocation3 + $0x128] sm:$0xff] }
  0x1c   :  { %506 = vmatpush1.msra.mxu0 %v2401_v16  ;;  %577 = vmatpush1.msra.mxu1 %v2403_v17  ;;  %v2476_v38 = vld [vmem:[#allocation3 + $0x138] sm:$0xff]  ;;  %v2480_v39 = vld [vmem:[#allocation3 + $0x120] sm:$0xff]  ;;  %v2482_v40 = vld [vmem:[#allocation3 + $0x130] sm:$0xff] }
  0x1d   :  { %1971 = vmatmul.mubr.msk.f32.gmra.mxu0 %vm211_vm0, %v182_v18  ;;  %1979 = vmatmul.mubr.msk.f32.gmra.mxu1 %vm211_vm0, %v182_v18  ;;  %v2486_v41 = vld [vmem:[#allocation3 + $0x108] sm:$0xff]  ;;  %v2488_v42 = vld [vmem:[#allocation3 + $0x118] sm:$0xff]  ;;  %v2494_v43 = vld [vmem:[#allocation3 + $0x100] sm:$0xff] }
  0x1e   :  { %507 = vmatprep.subr.mxu0 %v2412_v19  ;;  %578 = vmatprep.subr.mxu1 %v2414_v20  ;;  %v2496_v44 = vld [vmem:[#allocation3 + $0x110] sm:$0xff]  ;;  %v185_v45 = vld [vmem:[%s3376_s0 + $0x20] sm:$0xff]  ;;  %v2505_v46 = vld [vmem:[#allocation3 + $0xe8] sm:$0xff] }
  0x1f   :  { %508 = vmatpush1.msra.mxu0 %v2418_v21  ;;  %579 = vmatpush1.msra.mxu1 %v2420_v22  ;;  %v2507_v47 = vld [vmem:[#allocation3 + $0xf8] sm:$0xff]  ;;  %v2511_v48 = vld [vmem:[#allocation3 + $0xe0] sm:$0xff]  ;;  %v2513_v49 = vld [vmem:[#allocation3 + $0xf0] sm:$0xff] }
  0x20   :  { %509 = vmatprep.subr.mxu0 %v2424_v23  ;;  %580 = vmatprep.subr.mxu1 %v2426_v24  ;;  %v2517_v50 = vld [vmem:[#allocation3 + $0xc8] sm:$0xff]  ;;  %v2519_v51 = vld [vmem:[#allocation3 + $0xd8] sm:$0xff]  ;;  %v2525_v52 = vld [vmem:[#allocation3 + $0xc0] sm:$0xff] }
  0x21   :  { %312 = vmatprep.mubr.f32.mxu0 %v3385_v8  ;;  %425 = vmatprep.mubr.f32.mxu1 %v3385_v8  ;;  %v2527_v53 = vld [vmem:[#allocation3 + $0xd0] sm:$0xff]  ;;  %v186_v54 = vld [vmem:[%s3376_s0 + $0x28] sm:$0xff]  ;;  %v2538_v56 = vld [vmem:[#allocation3 + $0xb8] sm:$0xff] }
  0x22   :  { %510 = vmatpush1.msra.mxu0 %v2432_v25  ;;  %581 = vmatpush1.msra.mxu1 %v2434_v26  ;;  %v2536_v55 = vld [vmem:[#allocation3 + $0xa8] sm:$0xff]  ;;  %v2542_v57 = vld [vmem:[#allocation3 + $0xa0] sm:$0xff]  ;;  %v2544_v58 = vld [vmem:[#allocation3 + $0xb0] sm:$0xff] }
  0x23   :  { %1972 = vmatmul.mubr.msk.f32.gmra.mxu0 %vm211_vm0, %v183_v27  ;;  %1980 = vmatmul.mubr.msk.f32.gmra.mxu1 %vm211_vm0, %v183_v27  ;;  %v2548_v59 = vld [vmem:[#allocation3 + $0x88] sm:$0xff]  ;;  %v2550_v60 = vld [vmem:[#allocation3 + $0x98] sm:$0xff]  ;;  %v2556_v61 = vld [vmem:[#allocation3 + $0x80] sm:$0xff] }
  0x24   :  { %511 = vmatprep.subr.mxu0 %v2443_v28  ;;  %582 = vmatprep.subr.mxu1 %v2445_v29  ;;  %3475 = vst [vmem:[#allocation24_spill] sm:$0xff] %v2548_v59  ;;  %3476 = vst [vmem:[#allocation25_spill] sm:$0xff] %v2550_v60  ;;  %v2558_v62 = vld [vmem:[#allocation3 + $0x90] sm:$0xff]  ;;  %v2567_v0 = vld [vmem:[#allocation3 + $0x68] sm:$0xff] }
  0x25   :  { %512 = vmatpush1.msra.mxu0 %v2449_v30  ;;  %583 = vmatpush1.msra.mxu1 %v2451_v31  ;;  %3477 = vst [vmem:[#allocation26_spill] sm:$0xff] %v2556_v61  ;;  %3478 = vst [vmem:[#allocation27_spill] sm:$0xff] %v2558_v62  ;;  %v187_v63 = vld [vmem:[%s3376_s0 + $0x30] sm:$0xff]  ;;  %v2569_v1 = vld [vmem:[#allocation3 + $0x78] sm:$0xff] }
  0x26   :  { %513 = vmatprep.subr.mxu0 %v2455_v32  ;;  %584 = vmatprep.subr.mxu1 %v2457_v33  ;;  %3479 = vst [vmem:[#allocation28_spill] sm:$0xff] %v2567_v0  ;;  %3480 = vst [vmem:[#allocation29_spill] sm:$0xff] %v2569_v1  ;;  %v2573_v2 = vld [vmem:[#allocation3 + $0x60] sm:$0xff]  ;;  %v2575_v3 = vld [vmem:[#allocation3 + $0x70] sm:$0xff] }
  0x27   :  { %318 = vmatprep.mubr.f32.mxu0 %v3385_v8  ;;  %431 = vmatprep.mubr.f32.mxu1 %v3385_v8  ;;  %3481 = vst [vmem:[#allocation30_spill] sm:$0xff] %v2573_v2  ;;  %3482 = vst [vmem:[#allocation31_spill] sm:$0xff] %v2575_v3  ;;  %v2579_v4 = vld [vmem:[#allocation3 + $0x48] sm:$0xff]  ;;  %v2581_v5 = vld [vmem:[#allocation3 + $0x58] sm:$0xff] }
  0x28   :  { %514 = vmatpush1.msra.mxu0 %v2463_v34  ;;  %585 = vmatpush1.msra.mxu1 %v2465_v35  ;;  %3483 = vst [vmem:[#allocation32_spill] sm:$0xff] %v2579_v4  ;;  %3484 = vst [vmem:[#allocation33_spill] sm:$0xff] %v2581_v5  ;;  %v2587_v6 = vld [vmem:[#allocation3 + $0x40] sm:$0xff]  ;;  %v2589_v7 = vld [vmem:[#allocation3 + $0x50] sm:$0xff] }
  0x29   :  { %1973 = vmatmul.mubr.msk.f32.gmra.mxu0 %vm211_vm0, %v184_v36  ;;  %1981 = vmatmul.mubr.msk.f32.gmra.mxu1 %vm211_vm0, %v184_v36  ;;  %3485 = vst [vmem:[#allocation34_spill] sm:$0xff] %v2587_v6  ;;  %3486 = vst [vmem:[#allocation35_spill] sm:$0xff] %v2589_v7  ;;  %v188_v9 = vld [vmem:[%s3376_s0 + $0x38] sm:$0xff]  ;;  %v2598_v18 = vld [vmem:[#allocation3 + $0x28] sm:$0xff] }
  0x2a   :  { %515 = vmatprep.subr.mxu0 %v2474_v37  ;;  %586 = vmatprep.subr.mxu1 %v2476_v38  ;;  %3487 = vst [vmem:[#allocation36_spill] sm:$0xff] %v2598_v18  ;;  %v2600_v27 = vld [vmem:[#allocation3 + $0x38] sm:$0xff]  ;;  %v2604_v36 = vld [vmem:[#allocation3 + $0x20] sm:$0xff] }
  0x2b   :  { %516 = vmatpush1.msra.mxu0 %v2480_v39  ;;  %587 = vmatpush1.msra.mxu1 %v2482_v40  ;;  %3488 = vst [vmem:[#allocation37_spill] sm:$0xff] %v2600_v27  ;;  %3489 = vst [vmem:[#allocation38_spill] sm:$0xff] %v2604_v36 }
  0x2c   :  { %517 = vmatprep.subr.mxu0 %v2486_v41  ;;  %588 = vmatprep.subr.mxu1 %v2488_v42 }
  0x2d   :  { %324 = vmatprep.mubr.f32.mxu0 %v3385_v8  ;;  %437 = vmatprep.mubr.f32.mxu1 %v3385_v8 }
  0x2e   :  { %518 = vmatpush1.msra.mxu0 %v2494_v43  ;;  %589 = vmatpush1.msra.mxu1 %v2496_v44 }
  0x2f   :  { %1974 = vmatmul.mubr.msk.f32.gmra.mxu0 %vm211_vm0, %v185_v45  ;;  %1982 = vmatmul.mubr.msk.f32.gmra.mxu1 %vm211_vm0, %v185_v45  ;;  %v2606_v45 = vld [vmem:[#allocation3 + $0x30] sm:$0xff] }
  0x30   :  { %519 = vmatprep.subr.mxu0 %v2505_v46  ;;  %590 = vmatprep.subr.mxu1 %v2507_v47  ;;  %3490 = vst [vmem:[#allocation39_spill] sm:$0xff] %v2606_v45 }
  0x31   :  { %520 = vmatpush1.msra.mxu0 %v2511_v48  ;;  %591 = vmatpush1.msra.mxu1 %v2513_v49 }
  0x32   :  { %521 = vmatprep.subr.mxu0 %v2517_v50  ;;  %592 = vmatprep.subr.mxu1 %v2519_v51 }
  0x33   :  { %330 = vmatprep.mubr.f32.mxu0 %v3385_v8  ;;  %443 = vmatprep.mubr.f32.mxu1 %v3385_v8 }
  0x34   :  { %522 = vmatpush1.msra.mxu0 %v2525_v52  ;;  %593 = vmatpush1.msra.mxu1 %v2527_v53 }
  0x35   :  { %1975 = vmatmul.mubr.msk.f32.gmra.mxu0 %vm211_vm0, %v186_v54  ;;  %1983 = vmatmul.mubr.msk.f32.gmra.mxu1 %vm211_vm0, %v186_v54  ;;  %v2610_v54 = vld [vmem:[#allocation3 + $0x8] sm:$0xff] }
  0x36   :  { %523 = vmatprep.subr.mxu0 %v2536_v55  ;;  %594 = vmatprep.subr.mxu1 %v2538_v56  ;;  %3491 = vst [vmem:[#allocation40_spill] sm:$0xff] %v2610_v54 }
  0x37   :  { %524 = vmatpush1.msra.mxu0 %v2542_v57  ;;  %595 = vmatpush1.msra.mxu1 %v2544_v58 }
  0x38   :  { %525 = vmatprep.subr.mxu0 %v2548_v59  ;;  %596 = vmatprep.subr.mxu1 %v2550_v60 }
  0x39   :  { %336 = vmatprep.mubr.f32.mxu0 %v3385_v8  ;;  %449 = vmatprep.mubr.f32.mxu1 %v3385_v8 }
  0x3a   :  { %526 = vmatpush1.msra.mxu0 %v2556_v61  ;;  %597 = vmatpush1.msra.mxu1 %v2558_v62 }
  0x3b   :  { %1976 = vmatmul.mubr.msk.f32.gmra.mxu0 %vm211_vm0, %v187_v63  ;;  %1984 = vmatmul.mubr.msk.f32.gmra.mxu1 %vm211_vm0, %v187_v63  ;;  %v2612_v63 = vld [vmem:[#allocation3 + $0x18] sm:$0xff] }
  0x3c   :  { %527 = vmatprep.subr.mxu0 %v2567_v0  ;;  %598 = vmatprep.subr.mxu1 %v2569_v1  ;;  %3492 = vst [vmem:[#allocation41_spill] sm:$0xff] %v2612_v63 }
  0x3d   :  { %528 = vmatpush1.msra.mxu0 %v2573_v2  ;;  %599 = vmatpush1.msra.mxu1 %v2575_v3 }
  0x3e   :  { %529 = vmatprep.subr.mxu0 %v2579_v4  ;;  %600 = vmatprep.subr.mxu1 %v2581_v5 }
  0x3f   :  { %342 = vmatprep.mubr.f32.mxu0 %v3385_v8  ;;  %455 = vmatprep.mubr.f32.mxu1 %v3385_v8  ;;  %v2616_v8 = vld [vmem:[#allocation3] sm:$0xff] }
  0x40   :  { %530 = vmatpush1.msra.mxu0 %v2587_v6  ;;  %601 = vmatpush1.msra.mxu1 %v2589_v7  ;;  %3493 = vst [vmem:[#allocation42_spill] sm:$0xff] %v2616_v8  ;;  %v2620_v7 = vld [vmem:[#allocation3 + $0x10] sm:$0xff] }
  0x41   :  { %1977 = vmatmul.mubr.msk.f32.gmra.mxu0 %vm211_vm0, %v188_v9  ;;  %1985 = vmatmul.mubr.msk.f32.gmra.mxu1 %vm211_vm0, %v188_v9  ;;  %3494 = vst [vmem:[#allocation43_spill] sm:$0xff] %v2620_v7  ;;  %v105_v9 = vld [vmem:[%s3378_s2] sm:$0xff] }
  0x42   :  { %531 = vmatprep.subr.mxu0 %v2598_v18  ;;  %602 = vmatprep.subr.mxu1 %v2600_v27  ;;  %v3495_v18 = vmov 0.0  }
  0x43   :  { %532 = vmatpush1.msra.mxu0 %v2604_v36  ;;  %603 = vmatpush1.msra.mxu1 %v2606_v45 }
  0x44   :  { %533 = vmatprep.subr.mxu0 %v2610_v54  ;;  %604 = vmatprep.subr.mxu1 %v2612_v63 }
  0x45   :  { %534 = vmatpush1.msra.mxu0 %v2616_v8  ;;  %567 = vmatprep.mubr.f32.mxu0 %v3495_v18 }
  0x46   :  { %605 = vmatpush1.msra.mxu1 %v2620_v7  ;;  %638 = vmatprep.mubr.f32.mxu1 %v3495_v18 }
  0x47   :  { %568 = vmatmul.mubr.f32.vlgmr.msra.gmra.mxu0 %v105_v9  ;;  %639 = vmatmul.mubr.f32.vlgmr.msra.gmra.mxu1 %v105_v9  ;;  %v3496_v9 = vld [vmem:[#allocation35_spill] sm:$0xff] }
  0x48   :  { %677 = vmatprep.subr.mxu0 %v2383_v10  ;;  %748 = vmatprep.subr.mxu1 %v2385_v11 }
  0x49   :  { %678 = vmatpush1.msra.mxu0 %v2389_v12  ;;  %749 = vmatpush1.msra.mxu1 %v2391_v13 }
  0x4a   :  { %679 = vmatprep.subr.mxu0 %v2393_v14  ;;  %750 = vmatprep.subr.mxu1 %v2397_v15 }
  0x4b   :  { %680 = vmatpush1.msra.mxu0 %v2401_v16  ;;  %751 = vmatpush1.msra.mxu1 %v2403_v17 }
  0x4c   :  { %681 = vmatprep.subr.mxu0 %v2412_v19  ;;  %752 = vmatprep.subr.mxu1 %v2414_v20 }
  0x4d   :  { %682 = vmatpush1.msra.mxu0 %v2418_v21  ;;  %753 = vmatpush1.msra.mxu1 %v2420_v22 }
  0x4e   :  { %683 = vmatprep.subr.mxu0 %v2424_v23  ;;  %754 = vmatprep.subr.mxu1 %v2426_v24 }
  0x4f   :  { %684 = vmatpush1.msra.mxu0 %v2432_v25  ;;  %755 = vmatpush1.msra.mxu1 %v2434_v26 }
  0x50   :  { %685 = vmatprep.subr.mxu0 %v2443_v28  ;;  %756 = vmatprep.subr.mxu1 %v2445_v29 }
  0x51   :  { %686 = vmatpush1.msra.mxu0 %v2449_v30  ;;  %757 = vmatpush1.msra.mxu1 %v2451_v31 }
  0x52   :  { %687 = vmatprep.subr.mxu0 %v2455_v32  ;;  %758 = vmatprep.subr.mxu1 %v2457_v33 }
  0x53   :  { %688 = vmatpush1.msra.mxu0 %v2463_v34  ;;  %759 = vmatpush1.msra.mxu1 %v2465_v35 }
  0x54   :  { %689 = vmatprep.subr.mxu0 %v2474_v37  ;;  %760 = vmatprep.subr.mxu1 %v2476_v38 }
  0x55   :  { %690 = vmatpush1.msra.mxu0 %v2480_v39  ;;  %761 = vmatpush1.msra.mxu1 %v2482_v40 }
  0x56   :  { %691 = vmatprep.subr.mxu0 %v2486_v41  ;;  %762 = vmatprep.subr.mxu1 %v2488_v42 }
  0x57   :  { %692 = vmatpush1.msra.mxu0 %v2494_v43  ;;  %763 = vmatpush1.msra.mxu1 %v2496_v44 }
  0x58   :  { %693 = vmatprep.subr.mxu0 %v2505_v46  ;;  %764 = vmatprep.subr.mxu1 %v2507_v47 }
  0x59   :  { %694 = vmatpush1.msra.mxu0 %v2511_v48  ;;  %765 = vmatpush1.msra.mxu1 %v2513_v49 }
  0x5a   :  { %695 = vmatprep.subr.mxu0 %v2517_v50  ;;  %766 = vmatprep.subr.mxu1 %v2519_v51 }
  0x5b   :  { %696 = vmatpush1.msra.mxu0 %v2525_v52  ;;  %767 = vmatpush1.msra.mxu1 %v2527_v53 }
  0x5c   :  { %697 = vmatprep.subr.mxu0 %v2536_v55  ;;  %768 = vmatprep.subr.mxu1 %v2538_v56 }
  0x5d   :  { %698 = vmatpush1.msra.mxu0 %v2542_v57  ;;  %769 = vmatpush1.msra.mxu1 %v2544_v58 }
  0x5e   :  { %699 = vmatprep.subr.mxu0 %v2548_v59  ;;  %770 = vmatprep.subr.mxu1 %v2550_v60  ;;  %v3497_v60 = vld [vmem:[#allocation36_spill] sm:$0xff] }
  0x5f   :  { %700 = vmatpush1.msra.mxu0 %v2556_v61  ;;  %771 = vmatpush1.msra.mxu1 %v2558_v62 }
  0x60   :  { %701 = vmatprep.subr.mxu0 %v2567_v0  ;;  %772 = vmatprep.subr.mxu1 %v2569_v1 }
  0x61   :  { %702 = vmatpush1.msra.mxu0 %v2573_v2  ;;  %773 = vmatpush1.msra.mxu1 %v2575_v3 }
  0x62   :  { %703 = vmatprep.subr.mxu0 %v2579_v4  ;;  %774 = vmatprep.subr.mxu1 %v2581_v5 }
  0x63   :  { %704 = vmatpush1.msra.mxu0 %v2587_v6  ;;  %775 = vmatpush1.msra.mxu1 %v3496_v9 }
  0x64   :  { %705 = vmatprep.subr.mxu0 %v3497_v60  ;;  %776 = vmatprep.subr.mxu1 %v2600_v27  ;;  %v191_v27 = vlaneseq }
  0x65   :  { %706 = vmatpush1.msra.mxu0 %v2604_v36  ;;  %777 = vmatpush1.msra.mxu1 %v2606_v45 }
  0x66   :  { %707 = vmatprep.subr.mxu0 %v2610_v54  ;;  %778 = vmatprep.subr.mxu1 %v2612_v63  ;;  %v192_v36 = vshrl.u32 %v191_v27, 7 }
  0x67   :  { %708 = vmatpush1.msra.mxu0 %v2616_v8  ;;  %741 = vmatprep.mubr.f32.mxu0 %v3495_v18  ;;  %v189_v8 = vld [vmem:[%s3377_s1] sm:$0xf] }
  0x68   :  { %779 = vmatpush1.msra.mxu1 %v2620_v7  ;;  %812 = vmatprep.mubr.f32.mxu1 %v3495_v18  ;;  %v193_v54 = vsub.s32 0, %v192_v36  ;;  %v201_v63 = vsub.s32 2, %v192_v36  ;;  %v197_v18 = vsub.s32 1, %v192_v36 }
  0x69   :  { %852 = vmatprep.subr.mxu0 %v2383_v10  ;;  %923 = vmatprep.subr.mxu1 %v2385_v11  ;;  %v205_v10 = vsub.s32 3, %v192_v36 }
  0x6a   :  { %v194_v6 = vrot.slane %v189_v8, %v193_v54  ;;  %v2710_v11 = vrot.slane %v189_v8, %v201_v63  ;;  %v198_v4 = vrot.slane %v189_v8, %v197_v18 }
  0x6b   :  { %v2712_v3 = vrot.slane %v189_v8, %v205_v10 }
  0xd7   :  { %v2699_v60 = vpop.f32.mrf.mxu0  ;;  %v2701_v45 = vpop.f32.mrf.mxu1 }
  0xd9   :  { %v2706_v9 = vpop.f32.mrf.mxu0  ;;  %v2708_v7 = vpop.f32.mrf.mxu1 }
  0xdd   :  { %v308_v27 = vpop.f32.mrf.mxu0  ;;  %v421_v5 = vpop.f32.mrf.mxu1 }
  0xde   :  { %v2714_v2 = vadd.f32 %v308_v27, %v194_v6  ;;  %v2717_v1 = vadd.f32 %v421_v5, %v2710_v11 }
  0xdf   :  { %v310_v0 = vpop.f32.mrf.mxu0  ;;  %v423_v62 = vpop.f32.mrf.mxu1 }
  0xe0   :  { %3498 = vst [vmem:[#allocation44_spill] sm:$0xff] %v2714_v2  ;;  %3499 = vst [vmem:[#allocation45_spill] sm:$0xff] %v2717_v1  ;;  %v2719_v61 = vadd.f32 %v310_v0, %v198_v4  ;;  %v2722_v59 = vadd.f32 %v423_v62, %v2712_v3 }
  0xe2   :  { %3500 = vst [vmem:[#allocation46_spill] sm:$0xff] %v2719_v61  ;;  %3501 = vst [vmem:[#allocation47_spill] sm:$0xff] %v2722_v59 }
  0xe3   :  { %v314_v36 = vpop.f32.mrf.mxu0  ;;  %v427_v54 = vpop.f32.mrf.mxu1 }
  0xe4   :  { %v2724_v63 = vadd.f32 %v314_v36, %v194_v6  ;;  %v2727_v18 = vadd.f32 %v427_v54, %v2710_v11 }
  0xe5   :  { %v316_v8 = vpop.f32.mrf.mxu0  ;;  %v429_v10 = vpop.f32.mrf.mxu1 }
  0xe6   :  { %3502 = vst [vmem:[#allocation48_spill] sm:$0xff] %v2724_v63  ;;  %3503 = vst [vmem:[#allocation49_spill] sm:$0xff] %v2727_v18  ;;  %v2729_v27 = vadd.f32 %v316_v8, %v198_v4  ;;  %v2732_v5 = vadd.f32 %v429_v10, %v2712_v3 }
  0xe8   :  { %3504 = vst [vmem:[#allocation50_spill] sm:$0xff] %v2729_v27  ;;  %3505 = vst [vmem:[#allocation51_spill] sm:$0xff] %v2732_v5 }
  0xe9   :  { %v320_v1 = vpop.f32.mrf.mxu0  ;;  %v433_v0 = vpop.f32.mrf.mxu1 }
  0xea   :  { %v2734_v61 = vadd.f32 %v320_v1, %v194_v6  ;;  %v2737_v62 = vadd.f32 %v433_v0, %v2710_v11 }
  0xeb   :  { %v322_v59 = vpop.f32.mrf.mxu0  ;;  %v435_v36 = vpop.f32.mrf.mxu1 }
  0xec   :  { %3506 = vst [vmem:[#allocation52_spill] sm:$0xff] %v2734_v61  ;;  %3507 = vst [vmem:[#allocation53_spill] sm:$0xff] %v2737_v62  ;;  %v2739_v63 = vadd.f32 %v322_v59, %v198_v4  ;;  %v2742_v54 = vadd.f32 %v435_v36, %v2712_v3 }
  0xee   :  { %3508 = vst [vmem:[#allocation54_spill] sm:$0xff] %v2739_v63  ;;  %3509 = vst [vmem:[#allocation55_spill] sm:$0xff] %v2742_v54 }
  0xef   :  { %v326_v18 = vpop.f32.mrf.mxu0  ;;  %v439_v8 = vpop.f32.mrf.mxu1 }
  0xf0   :  { %v2744_v27 = vadd.f32 %v326_v18, %v194_v6  ;;  %v2747_v10 = vadd.f32 %v439_v8, %v2710_v11 }
  0xf1   :  { %v328_v5 = vpop.f32.mrf.mxu0  ;;  %v441_v1 = vpop.f32.mrf.mxu1 }
  0xf2   :  { %3510 = vst [vmem:[#allocation56_spill] sm:$0xff] %v2744_v27  ;;  %3511 = vst [vmem:[#allocation57_spill] sm:$0xff] %v2747_v10  ;;  %v2749_v61 = vadd.f32 %v328_v5, %v198_v4  ;;  %v2752_v0 = vadd.f32 %v441_v1, %v2712_v3 }
  0xf4   :  { %3512 = vst [vmem:[#allocation58_spill] sm:$0xff] %v2749_v61  ;;  %3513 = vst [vmem:[#allocation59_spill] sm:$0xff] %v2752_v0 }
  0xf5   :  { %v332_v62 = vpop.f32.mrf.mxu0  ;;  %v445_v59 = vpop.f32.mrf.mxu1 }
  0xf6   :  { %v2754_v63 = vadd.f32 %v332_v62, %v194_v6  ;;  %v2757_v36 = vadd.f32 %v445_v59, %v2710_v11 }
  0xf7   :  { %v334_v54 = vpop.f32.mrf.mxu0  ;;  %v447_v18 = vpop.f32.mrf.mxu1 }
  0xf8   :  { %3514 = vst [vmem:[#allocation60_spill] sm:$0xff] %v2754_v63  ;;  %3515 = vst [vmem:[#allocation61_spill] sm:$0xff] %v2757_v36  ;;  %v2759_v27 = vadd.f32 %v334_v54, %v198_v4  ;;  %v2762_v8 = vadd.f32 %v447_v18, %v2712_v3 }
  0xfa   :  { %3516 = vst [vmem:[#allocation62_spill] sm:$0xff] %v2759_v27  ;;  %3517 = vst [vmem:[#allocation63_spill] sm:$0xff] %v2762_v8 }
  0xfb   :  { %v338_v10 = vpop.f32.mrf.mxu0  ;;  %v451_v5 = vpop.f32.mrf.mxu1 }
  0xfc   :  { %v2764_v61 = vadd.f32 %v338_v10, %v194_v6  ;;  %v2767_v1 = vadd.f32 %v451_v5, %v2710_v11 }
  0xfd   :  { %v340_v0 = vpop.f32.mrf.mxu0  ;;  %v453_v62 = vpop.f32.mrf.mxu1 }
  0xfe   :  { %3518 = vst [vmem:[#allocation64_spill] sm:$0xff] %v2764_v61  ;;  %3519 = vst [vmem:[#allocation65_spill] sm:$0xff] %v2767_v1  ;;  %v2769_v63 = vadd.f32 %v340_v0, %v198_v4  ;;  %v2772_v59 = vadd.f32 %v453_v62, %v2712_v3  ;;  %v303_v0 = vadd.f32 %v2699_v60, %v194_v6 }
  0xff   :  { %v305_v62 = vadd.f32 %v2706_v9, %v198_v4 }
 0x100   :  { %3520 = vst [vmem:[#allocation66_spill] sm:$0xff] %v2769_v63  ;;  %3521 = vst [vmem:[#allocation67_spill] sm:$0xff] %v2772_v59 }
 0x101   :  { %v344_v36 = vpop.f32.mrf.mxu0  ;;  %v457_v54 = vpop.f32.mrf.mxu1 }
 0x102   :  { %v2774_v27 = vadd.f32 %v344_v36, %v194_v6  ;;  %v2777_v18 = vadd.f32 %v457_v54, %v2710_v11 }
 0x103   :  { %v346_v8 = vpop.f32.mrf.mxu0  ;;  %v459_v10 = vpop.f32.mrf.mxu1 }
 0x104   :  { %3522 = vst [vmem:[#allocation68_spill] sm:$0xff] %v2774_v27  ;;  %3523 = vst [vmem:[#allocation69_spill] sm:$0xff] %v2777_v18  ;;  %v2779_v61 = vadd.f32 %v346_v8, %v198_v4  ;;  %v2782_v5 = vadd.f32 %v459_v10, %v2712_v3  ;;  %v418_v8 = vadd.f32 %v2708_v7, %v2712_v3  ;;  %v107_v3 = vld [vmem:[%s3379_s3] sm:$0xff]  ;;  %s2301_s3 = smov [#allocation10]  }
 0x105   :  { %v416_v10 = vadd.f32 %v2701_v45, %v2710_v11  ;;  %s1917_s21 = sshll.u32 %s2301_s3, 4  ;;  %s1918_s21 = int_to_ptr.vmem [resolvable:$true] %s1917_s21 }
 0x106   :  { %3524 = vst [vmem:[#allocation70_spill] sm:$0xff] %v2779_v61  ;;  %3525 = vst [vmem:[#allocation71_spill] sm:$0xff] %v2782_v5  ;;  %s2231_s4 = scalar_lea.vmem %s1918_s21, 128  ;;  %p2236_p6 = scmp.lt.s32.totalorder %s1918_s21, %s1918_s21 }
 0x107   :  { %v569_v1 = vpop.f32.mrf.mxu0  ;;  %v640_v27 = vpop.f32.mrf.mxu1  ;;  %p2232_p5 = scmp.ne.s32.totalorder %s1918_s21, %s2231_s4  ;;  %p2237_p7 = scmp.lt.s32.totalorder %s2231_s4, %s2231_s4 }
 0x108   :  { %v570_v59 = vadd.f32 %v569_v1, %v303_v0  ;;  %v641_v5 = vadd.f32 %v640_v27, %v416_v10  ;;  %v3530_v10 = vld [vmem:[#allocation28_spill] sm:$0xff] }
 0x109   :  { %v571_v63 = vpop.f32.mrf.mxu0  ;;  %v642_v18 = vpop.f32.mrf.mxu1  ;;  %p2238_p8 = por %p2237_p7, %p2236_p6 }
 0x10a   :  { %v1986_v2 = vmul.f32 -1.442695, %v570_v59  ;;  %v572_v36 = vadd.f32 %v571_v63, %v305_v62  ;;  %v643_v61 = vadd.f32 %v642_v18, %v418_v8  ;;  %v3526_v62 = vld [vmem:[#allocation24_spill] sm:$0xff]  ;;  %v3529_v8 = vld [vmem:[#allocation27_spill] sm:$0xff] }
 0x10b   :  { %p2239_p9 = pnand %p2238_p8, %p2232_p5 }
 0x10c   :  { %2019 = vpow2.f32 %v1986_v2  ;;  %v1987_v54 = vmul.f32 -1.442695, %v572_v36  ;;  %v1988_v60 = vmul.f32 -1.442695, %v643_v61  ;;  %v3527_v36 = vld [vmem:[#allocation25_spill] sm:$0xff] }
 0x10e   :  { %2021 = vpow2.f32 %v1987_v54  ;;  %v3528_v54 = vld [vmem:[#allocation26_spill] sm:$0xff] }
 0x10f   :  { %2023 = vpow2.f32 %v1988_v60  ;;  %v3531_v60 = vld [vmem:[#allocation29_spill] sm:$0xff] }
 0x119   :  { %v2020_v6 = vpop.eup %2019 }
 0x11a   :  { %v648_v4 = vadd.f32 1.0, %v2020_v6  ;;  %v3532_v6 = vld [vmem:[#allocation30_spill] sm:$0xff] }
 0x11b   :  { %v2022_v9 = vpop.eup %2021 }
 0x11c   :  { %2025 = vrcp.f32 %v648_v4  ;;  %v654_v63 = vadd.f32 1.0, %v2022_v9  ;;  %v2024_v2 = vpop.eup %2023  ;;  %v3533_v4 = vld [vmem:[#allocation31_spill] sm:$0xff]  ;;  %v3534_v9 = vld [vmem:[#allocation32_spill] sm:$0xff] }
 0x11d   :  { %2027 = vtanh.f32 %v641_v5  ;;  %v661_v18 = vadd.f32 1.0, %v2024_v2  ;;  %v3536_v2 = vld [vmem:[#allocation34_spill] sm:$0xff] }
 0x11e   :  { %2029 = vrcp.f32 %v654_v63  ;;  %v3535_v63 = vld [vmem:[#allocation33_spill] sm:$0xff] }
 0x11f   :  { %2031 = vrcp.f32 %v661_v18  ;;  %v3541_v18 = vld [vmem:[#allocation39_spill] sm:$0xff] }
 0x129   :  { %v2026_v1 = vpop.eup %2025 }
 0x12a   :  { %v2028_v7 = vpop.eup %2027 }
 0x12b   :  { %v2030_v59 = vpop.eup %2029  ;;  %v665_v11 = vmul.f32 %v2028_v7, %v2026_v1  ;;  %v3537_v1 = vld [vmem:[#allocation35_spill] sm:$0xff]  ;;  %v3539_v7 = vld [vmem:[#allocation37_spill] sm:$0xff] }
 0x12c   :  { %v664_v61 = vmul.f32 %v2030_v59, %v107_v3  ;;  %v2032_v27 = vpop.eup %2031  ;;  %v3538_v3 = vld [vmem:[#allocation36_spill] sm:$0xff]  ;;  %v3540_v59 = vld [vmem:[#allocation38_spill] sm:$0xff] }
 0x12e   :  { %v2793_v45 = vadd.f32 %v665_v11, %v664_v61  ;;  %v3542_v11 = vld [vmem:[#allocation40_spill] sm:$0xff]  ;;  %v3543_v61 = vld [vmem:[#allocation41_spill] sm:$0xff] }
 0x130   :  { %2033 = vtanh.f32 %v2793_v45 }
 0x13d   :  { %v2034_v0 = vpop.eup %2033 }
 0x13e   :  { %v668_v5 = vmul.f32 %v2034_v0, %v2032_v27  ;;  %v3544_v27 = vld [vmem:[#allocation42_spill] sm:$0xff]  ;;  %v3545_v0 = vmov 0.0  }
 0x140   :  { %669 = vst [vmem:[#allocation8] sm:$0xff] %v668_v5  ;;  %742 = vmatmul.mubr.f32.vlgmr.msra.gmra.mxu0 %v668_v5  ;;  %813 = vmatmul.mubr.f32.vlgmr.msra.gmra.mxu1 %v668_v5  ;;  %v3546_v5 = vld [vmem:[#allocation43_spill] sm:$0xff] }
 0x141   :  { %853 = vmatpush1.msra.mxu0 %v2389_v12  ;;  %924 = vmatpush1.msra.mxu1 %v2391_v13 }
 0x142   :  { %854 = vmatprep.subr.mxu0 %v2393_v14  ;;  %925 = vmatprep.subr.mxu1 %v2397_v15 }
 0x143   :  { %855 = vmatpush1.msra.mxu0 %v2401_v16  ;;  %926 = vmatpush1.msra.mxu1 %v2403_v17 }
 0x144   :  { %856 = vmatprep.subr.mxu0 %v2412_v19  ;;  %927 = vmatprep.subr.mxu1 %v2414_v20 }
 0x145   :  { %857 = vmatpush1.msra.mxu0 %v2418_v21  ;;  %928 = vmatpush1.msra.mxu1 %v2420_v22 }
 0x146   :  { %858 = vmatprep.subr.mxu0 %v2424_v23  ;;  %929 = vmatprep.subr.mxu1 %v2426_v24 }
 0x147   :  { %859 = vmatpush1.msra.mxu0 %v2432_v25  ;;  %930 = vmatpush1.msra.mxu1 %v2434_v26 }
 0x148   :  { %860 = vmatprep.subr.mxu0 %v2443_v28  ;;  %931 = vmatprep.subr.mxu1 %v2445_v29 }
 0x149   :  { %861 = vmatpush1.msra.mxu0 %v2449_v30  ;;  %932 = vmatpush1.msra.mxu1 %v2451_v31 }
 0x14a   :  { %862 = vmatprep.subr.mxu0 %v2455_v32  ;;  %933 = vmatprep.subr.mxu1 %v2457_v33 }
 0x14b   :  { %863 = vmatpush1.msra.mxu0 %v2463_v34  ;;  %934 = vmatpush1.msra.mxu1 %v2465_v35 }
 0x14c   :  { %864 = vmatprep.subr.mxu0 %v2474_v37  ;;  %935 = vmatprep.subr.mxu1 %v2476_v38 }
 0x14d   :  { %865 = vmatpush1.msra.mxu0 %v2480_v39  ;;  %936 = vmatpush1.msra.mxu1 %v2482_v40 }
 0x14e   :  { %866 = vmatprep.subr.mxu0 %v2486_v41  ;;  %937 = vmatprep.subr.mxu1 %v2488_v42 }
 0x14f   :  { %867 = vmatpush1.msra.mxu0 %v2494_v43  ;;  %938 = vmatpush1.msra.mxu1 %v2496_v44 }
 0x150   :  { %868 = vmatprep.subr.mxu0 %v2505_v46  ;;  %939 = vmatprep.subr.mxu1 %v2507_v47 }
 0x151   :  { %869 = vmatpush1.msra.mxu0 %v2511_v48  ;;  %940 = vmatpush1.msra.mxu1 %v2513_v49 }
 0x152   :  { %870 = vmatprep.subr.mxu0 %v2517_v50  ;;  %941 = vmatprep.subr.mxu1 %v2519_v51 }
 0x153   :  { %871 = vmatpush1.msra.mxu0 %v2525_v52  ;;  %942 = vmatpush1.msra.mxu1 %v2527_v53 }
 0x154   :  { %872 = vmatprep.subr.mxu0 %v2536_v55  ;;  %943 = vmatprep.subr.mxu1 %v2538_v56 }
 0x155   :  { %873 = vmatpush1.msra.mxu0 %v2542_v57  ;;  %944 = vmatpush1.msra.mxu1 %v2544_v58 }
 0x156   :  { %874 = vmatprep.subr.mxu0 %v3526_v62  ;;  %945 = vmatprep.subr.mxu1 %v3527_v36 }
 0x157   :  { %875 = vmatpush1.msra.mxu0 %v3528_v54  ;;  %946 = vmatpush1.msra.mxu1 %v3529_v8 }
 0x158   :  { %876 = vmatprep.subr.mxu0 %v3530_v10  ;;  %947 = vmatprep.subr.mxu1 %v3531_v60  ;;  %v3552_v60 = vld [vmem:[#allocation45_spill] sm:$0xff] }
 0x159   :  { %877 = vmatpush1.msra.mxu0 %v3532_v6  ;;  %948 = vmatpush1.msra.mxu1 %v3533_v4  ;;  %v3551_v6 = vld [vmem:[#allocation47_spill] sm:$0xff] }
 0x15a   :  { %878 = vmatprep.subr.mxu0 %v3534_v9  ;;  %949 = vmatprep.subr.mxu1 %v3535_v63 }
 0x15b   :  { %879 = vmatpush1.msra.mxu0 %v3536_v2  ;;  %950 = vmatpush1.msra.mxu1 %v3537_v1  ;;  %v3547_v1 = vld [vmem:[#allocation22_spill] sm:$0xff] }
 0x15c   :  { %880 = vmatprep.subr.mxu0 %v3538_v3  ;;  %951 = vmatprep.subr.mxu1 %v3539_v7  ;;  %v3548_v3 = vld [vmem:[#allocation23_spill] sm:$0xff] }
 0x15d   :  { %881 = vmatpush1.msra.mxu0 %v3540_v59  ;;  %952 = vmatpush1.msra.mxu1 %v3541_v18  ;;  %v3549_v59 = vld [vmem:[#allocation44_spill] sm:$0xff] }
 0x15e   :  { %882 = vmatprep.subr.mxu0 %v3542_v11  ;;  %953 = vmatprep.subr.mxu1 %v3543_v61  ;;  %v3550_v11 = vld [vmem:[#allocation46_spill] sm:$0xff] }
 0x15f   :  { %883 = vmatpush1.msra.mxu0 %v3544_v27  ;;  %916 = vmatprep.mubr.f32.mxu0 %v3545_v0 }
 0x160   :  { %954 = vmatpush1.msra.mxu1 %v3546_v5  ;;  %987 = vmatprep.mubr.f32.mxu1 %v3545_v0 }
 0x161   :  { %1027 = vmatprep.subr.mxu0 %v3547_v1  ;;  %1098 = vmatprep.subr.mxu1 %v3548_v3 }
 0x200   :  { %v743_v7 = vpop.f32.mrf.mxu0  ;;  %v814_v61 = vpop.f32.mrf.mxu1 }
 0x201   :  { %v744_v2 = vadd.f32 %v743_v7, %v3549_v59  ;;  %v815_v0 = vadd.f32 %v814_v61, %v3552_v60 }
 0x202   :  { %v745_v18 = vpop.f32.mrf.mxu0  ;;  %v816_v4 = vpop.f32.mrf.mxu1 }
 0x203   :  { %v1989_v63 = vmul.f32 -1.442695, %v744_v2  ;;  %v746_v9 = vadd.f32 %v745_v18, %v3550_v11  ;;  %v817_v5 = vadd.f32 %v816_v4, %v3551_v6 }
 0x205   :  { %2035 = vpow2.f32 %v1989_v63  ;;  %v1990_v27 = vmul.f32 -1.442695, %v746_v9  ;;  %v1991_v10 = vmul.f32 -1.442695, %v817_v5  ;;  %v3576_v5 = vld [vmem:[#allocation49_spill] sm:$0xff] }
 0x207   :  { %2037 = vpow2.f32 %v1990_v27 }
 0x208   :  { %2039 = vtanh.f32 %v815_v0 }
 0x209   :  { %2041 = vpow2.f32 %v1991_v10  ;;  %v3575_v10 = vld [vmem:[#allocation51_spill] sm:$0xff] }
 0x212   :  { %v2036_v1 = vpop.eup %2035 }
 0x213   :  { %v822_v8 = vadd.f32 1.0, %v2036_v1 }
 0x214   :  { %v2038_v3 = vpop.eup %2037 }
 0x215   :  { %2043 = vrcp.f32 %v822_v8  ;;  %v828_v7 = vadd.f32 1.0, %v2038_v3  ;;  %v2040_v2 = vpop.eup %2039 }
 0x216   :  { %v2042_v59 = vpop.eup %2041 }
 0x217   :  { %2045 = vrcp.f32 %v828_v7  ;;  %v835_v11 = vadd.f32 1.0, %v2042_v59 }
 0x219   :  { %2047 = vrcp.f32 %v835_v11 }
 0x222   :  { %v2044_v63 = vpop.eup %2043 }
 0x223   :  { %v839_v18 = vmul.f32 %v2044_v63, %v2040_v2 }
 0x224   :  { %v2046_v9 = vpop.eup %2045 }
 0x225   :  { %v838_v27 = vmul.f32 %v2046_v9, %v2793_v45 }
 0x226   :  { %v2048_v60 = vpop.eup %2047 }
 0x227   :  { %v2867_v6 = vadd.f32 %v839_v18, %v838_v27 }
 0x229   :  { %2049 = vtanh.f32 %v2867_v6 }
 0x236   :  { %v2050_v4 = vpop.eup %2049 }
 0x237   :  { %v842_v61 = vmul.f32 %v2050_v4, %v2048_v60 }
 0x239   :  { %844 = vst [vmem:[#allocation8 + $0x8] sm:$0xff] %v842_v61  ;;  %917 = vmatmul.mubr.f32.vlgmr.msra.gmra.mxu0 %v842_v61  ;;  %988 = vmatmul.mubr.f32.vlgmr.msra.gmra.mxu1 %v842_v61 }
 0x23a   :  { %1028 = vmatpush1.msra.mxu0 %v2389_v12  ;;  %1099 = vmatpush1.msra.mxu1 %v2391_v13  ;;  %v3553_v12 = vld [vmem:[#allocation27_spill] sm:$0xff]  ;;  %v3554_v13 = vld [vmem:[#allocation28_spill] sm:$0xff] }
 0x23b   :  { %1029 = vmatprep.subr.mxu0 %v2393_v14  ;;  %1100 = vmatprep.subr.mxu1 %v2397_v15  ;;  %v3555_v14 = vld [vmem:[#allocation29_spill] sm:$0xff]  ;;  %v3556_v15 = vld [vmem:[#allocation30_spill] sm:$0xff] }
 0x23c   :  { %1030 = vmatpush1.msra.mxu0 %v2401_v16  ;;  %1101 = vmatpush1.msra.mxu1 %v2403_v17  ;;  %v3557_v16 = vld [vmem:[#allocation31_spill] sm:$0xff]  ;;  %v3558_v17 = vld [vmem:[#allocation32_spill] sm:$0xff] }
 0x23d   :  { %1031 = vmatprep.subr.mxu0 %v2412_v19  ;;  %1102 = vmatprep.subr.mxu1 %v2414_v20  ;;  %v3559_v19 = vld [vmem:[#allocation33_spill] sm:$0xff]  ;;  %v3560_v20 = vld [vmem:[#allocation34_spill] sm:$0xff] }
 0x23e   :  { %1032 = vmatpush1.msra.mxu0 %v2418_v21  ;;  %1103 = vmatpush1.msra.mxu1 %v2420_v22  ;;  %v3561_v21 = vld [vmem:[#allocation35_spill] sm:$0xff]  ;;  %v3562_v22 = vld [vmem:[#allocation36_spill] sm:$0xff] }
 0x23f   :  { %1033 = vmatprep.subr.mxu0 %v2424_v23  ;;  %1104 = vmatprep.subr.mxu1 %v2426_v24  ;;  %v3563_v23 = vld [vmem:[#allocation37_spill] sm:$0xff]  ;;  %v3564_v24 = vld [vmem:[#allocation38_spill] sm:$0xff] }
 0x240   :  { %1034 = vmatpush1.msra.mxu0 %v2432_v25  ;;  %1105 = vmatpush1.msra.mxu1 %v2434_v26  ;;  %v3565_v25 = vld [vmem:[#allocation39_spill] sm:$0xff]  ;;  %v3566_v26 = vld [vmem:[#allocation40_spill] sm:$0xff] }
 0x241   :  { %1035 = vmatprep.subr.mxu0 %v2443_v28  ;;  %1106 = vmatprep.subr.mxu1 %v2445_v29  ;;  %v3567_v28 = vld [vmem:[#allocation41_spill] sm:$0xff]  ;;  %v3568_v29 = vld [vmem:[#allocation42_spill] sm:$0xff] }
 0x242   :  { %1036 = vmatpush1.msra.mxu0 %v2449_v30  ;;  %1107 = vmatpush1.msra.mxu1 %v2451_v31  ;;  %v3569_v30 = vmov 0.0   ;;  %v3570_v31 = vld [vmem:[#allocation43_spill] sm:$0xff] }
 0x243   :  { %1037 = vmatprep.subr.mxu0 %v2455_v32  ;;  %1108 = vmatprep.subr.mxu1 %v2457_v33  ;;  %v2934_v32 = vld [vmem:[#allocation3 + $0x1e8] sm:$0xff]  ;;  %v2937_v33 = vld [vmem:[#allocation3 + $0x1f8] sm:$0xff] }
 0x244   :  { %1038 = vmatpush1.msra.mxu0 %v2463_v34  ;;  %1109 = vmatpush1.msra.mxu1 %v2465_v35  ;;  %3571 = vst [vmem:[#allocation24_spill] sm:$0xff] %v2934_v32  ;;  %3572 = vst [vmem:[#allocation25_spill] sm:$0xff] %v2937_v33  ;;  %v3573_v35 = vld [vmem:[#allocation48_spill] sm:$0xff] }
 0x245   :  { %1039 = vmatprep.subr.mxu0 %v2474_v37  ;;  %1110 = vmatprep.subr.mxu1 %v2476_v38 }
 0x246   :  { %1040 = vmatpush1.msra.mxu0 %v2480_v39  ;;  %1111 = vmatpush1.msra.mxu1 %v2482_v40  ;;  %v3574_v40 = vld [vmem:[#allocation50_spill] sm:$0xff] }
 0x247   :  { %1041 = vmatprep.subr.mxu0 %v2486_v41  ;;  %1112 = vmatprep.subr.mxu1 %v2488_v42 }
 0x248   :  { %1042 = vmatpush1.msra.mxu0 %v2494_v43  ;;  %1113 = vmatpush1.msra.mxu1 %v2496_v44 }
 0x249   :  { %1043 = vmatprep.subr.mxu0 %v2505_v46  ;;  %1114 = vmatprep.subr.mxu1 %v2507_v47 }
 0x24a   :  { %1044 = vmatpush1.msra.mxu0 %v2511_v48  ;;  %1115 = vmatpush1.msra.mxu1 %v2513_v49 }
 0x24b   :  { %1045 = vmatprep.subr.mxu0 %v2517_v50  ;;  %1116 = vmatprep.subr.mxu1 %v2519_v51 }
 0x24c   :  { %1046 = vmatpush1.msra.mxu0 %v2525_v52  ;;  %1117 = vmatpush1.msra.mxu1 %v2527_v53 }
 0x24d   :  { %1047 = vmatprep.subr.mxu0 %v2536_v55  ;;  %1118 = vmatprep.subr.mxu1 %v2538_v56 }
 0x24e   :  { %1048 = vmatpush1.msra.mxu0 %v2542_v57  ;;  %1119 = vmatpush1.msra.mxu1 %v2544_v58 }
 0x24f   :  { %1049 = vmatprep.subr.mxu0 %v3526_v62  ;;  %1120 = vmatprep.subr.mxu1 %v3527_v36 }
 0x250   :  { %1050 = vmatpush1.msra.mxu0 %v3528_v54  ;;  %1121 = vmatpush1.msra.mxu1 %v3553_v12 }
 0x251   :  { %1051 = vmatprep.subr.mxu0 %v3554_v13  ;;  %1122 = vmatprep.subr.mxu1 %v3555_v14 }
 0x252   :  { %1052 = vmatpush1.msra.mxu0 %v3556_v15  ;;  %1123 = vmatpush1.msra.mxu1 %v3557_v16 }
 0x253   :  { %1053 = vmatprep.subr.mxu0 %v3558_v17  ;;  %1124 = vmatprep.subr.mxu1 %v3559_v19 }
 0x254   :  { %1054 = vmatpush1.msra.mxu0 %v3560_v20  ;;  %1125 = vmatpush1.msra.mxu1 %v3561_v21 }
 0x255   :  { %1055 = vmatprep.subr.mxu0 %v3562_v22  ;;  %1126 = vmatprep.subr.mxu1 %v3563_v23 }
 0x256   :  { %1056 = vmatpush1.msra.mxu0 %v3564_v24  ;;  %1127 = vmatpush1.msra.mxu1 %v3565_v25 }
 0x257   :  { %1057 = vmatprep.subr.mxu0 %v3566_v26  ;;  %1128 = vmatprep.subr.mxu1 %v3567_v28 }
 0x258   :  { %1058 = vmatpush1.msra.mxu0 %v3568_v29  ;;  %1091 = vmatprep.mubr.f32.mxu0 %v3569_v30 }
 0x259   :  { %1129 = vmatpush1.msra.mxu1 %v3570_v31  ;;  %1162 = vmatprep.mubr.f32.mxu1 %v3569_v30 }
 0x25a   :  { %1202 = vmatprep.subr.mxu0 %v2934_v32  ;;  %1273 = vmatprep.subr.mxu1 %v2937_v33 }
 0x2f9   :  { %v918_v34 = vpop.f32.mrf.mxu0  ;;  %v989_v42 = vpop.f32.mrf.mxu1 }
 0x2fa   :  { %v919_v37 = vadd.f32 %v918_v34, %v3573_v35  ;;  %v990_v1 = vadd.f32 %v989_v42, %v3576_v5  ;;  %v2960_v42 = vld [vmem:[#allocation3 + $0x1c0] sm:$0xff]  ;;  %v2975_v5 = vld [vmem:[#allocation3 + $0x1b0] sm:$0xff] }
 0x2fb   :  { %v920_v38 = vpop.f32.mrf.mxu0  ;;  %v991_v8 = vpop.f32.mrf.mxu1 }
 0x2fc   :  { %v1992_v39 = vmul.f32 -1.442695, %v919_v37  ;;  %v921_v41 = vadd.f32 %v920_v38, %v3574_v40  ;;  %v992_v0 = vadd.f32 %v991_v8, %v3575_v10  ;;  %v2951_v40 = vld [vmem:[#allocation3 + $0x1f0] sm:$0xff]  ;;  %v2966_v8 = vld [vmem:[#allocation3 + $0x1a8] sm:$0xff]  ;;  %v2969_v10 = vld [vmem:[#allocation3 + $0x1b8] sm:$0xff] }
 0x2fe   :  { %2051 = vpow2.f32 %v1992_v39  ;;  %v1993_v45 = vmul.f32 -1.442695, %v921_v41  ;;  %v1994_v3 = vmul.f32 -1.442695, %v992_v0  ;;  %v2948_v39 = vld [vmem:[#allocation3 + $0x1e0] sm:$0xff]  ;;  %v2957_v41 = vld [vmem:[#allocation3 + $0x1d8] sm:$0xff] }
 0x2ff   :  { %v2972_v0 = vld [vmem:[#allocation3 + $0x1a0] sm:$0xff] }
 0x300   :  { %2053 = vpow2.f32 %v1993_v45  ;;  %v2963_v45 = vld [vmem:[#allocation3 + $0x1d0] sm:$0xff] }
 0x301   :  { %2055 = vtanh.f32 %v990_v1  ;;  %v2978_v1 = vld [vmem:[#allocation3 + $0x188] sm:$0xff] }
 0x302   :  { %2057 = vpow2.f32 %v1994_v3  ;;  %v2981_v3 = vld [vmem:[#allocation3 + $0x198] sm:$0xff] }
 0x30b   :  { %v2052_v7 = vpop.eup %2051 }
 0x30c   :  { %v997_v2 = vadd.f32 1.0, %v2052_v7  ;;  %v2984_v7 = vld [vmem:[#allocation3 + $0x180] sm:$0xff] }
 0x30d   :  { %v2054_v59 = vpop.eup %2053 }
 0x30e   :  { %2059 = vrcp.f32 %v997_v2  ;;  %v1003_v63 = vadd.f32 1.0, %v2054_v59  ;;  %v2056_v18 = vpop.eup %2055  ;;  %v2987_v2 = vld [vmem:[#allocation3 + $0x190] sm:$0xff]  ;;  %v2990_v59 = vld [vmem:[#allocation3 + $0x168] sm:$0xff] }
 0x30f   :  { %v2058_v9 = vpop.eup %2057 }
 0x310   :  { %2061 = vrcp.f32 %v1003_v63  ;;  %v1010_v4 = vadd.f32 1.0, %v2058_v9  ;;  %v2993_v63 = vld [vmem:[#allocation3 + $0x178] sm:$0xff]  ;;  %v2999_v9 = vld [vmem:[#allocation3 + $0x170] sm:$0xff] }
 0x312   :  { %2063 = vrcp.f32 %v1010_v4  ;;  %v3011_v4 = vld [vmem:[#allocation3 + $0x150] sm:$0xff] }
 0x313   :  { %3578 = vst [vmem:[#allocation22_spill] sm:$0xff] %v3011_v4 }
 0x31b   :  { %v2060_v11 = vpop.eup %2059 }
 0x31c   :  { %v1014_v27 = vmul.f32 %v2060_v11, %v2056_v18  ;;  %v2996_v18 = vld [vmem:[#allocation3 + $0x160] sm:$0xff]  ;;  %v3002_v11 = vld [vmem:[#allocation3 + $0x148] sm:$0xff] }
 0x31d   :  { %v2062_v60 = vpop.eup %2061 }
 0x31e   :  { %v1013_v61 = vmul.f32 %v2062_v60, %v2867_v6  ;;  %v2954_v6 = vld [vmem:[#allocation3 + $0x1c8] sm:$0xff]  ;;  %v3008_v60 = vld [vmem:[#allocation3 + $0x140] sm:$0xff] }
 0x31f   :  { %v2064_v35 = vpop.eup %2063  ;;  %3577 = vst [vmem:[#allocation26_spill] sm:$0xff] %v3008_v60 }
 0x320   :  { %v2945_v34 = vadd.f32 %v1014_v27, %v1013_v61  ;;  %v3005_v27 = vld [vmem:[#allocation3 + $0x158] sm:$0xff]  ;;  %v3014_v61 = vld [vmem:[#allocation3 + $0x128] sm:$0xff] }
 0x322   :  { %2065 = vtanh.f32 %v2945_v34 }
 0x32f   :  { %v2066_v37 = vpop.eup %2065 }
 0x330   :  { %v1017_v38 = vmul.f32 %v2066_v37, %v2064_v35  ;;  %v3017_v35 = vld [vmem:[#allocation3 + $0x138] sm:$0xff]  ;;  %v3020_v37 = vld [vmem:[#allocation3 + $0x120] sm:$0xff] }
 0x332   :  { %1019 = vst [vmem:[#allocation8 + $0x10] sm:$0xff] %v1017_v38  ;;  %1092 = vmatmul.mubr.f32.vlgmr.msra.gmra.mxu0 %v1017_v38  ;;  %1163 = vmatmul.mubr.f32.vlgmr.msra.gmra.mxu1 %v1017_v38  ;;  %v3023_v38 = vld [vmem:[#allocation3 + $0x130] sm:$0xff] }
 0x333   :  { %1203 = vmatpush1.msra.mxu0 %v2948_v39  ;;  %1274 = vmatpush1.msra.mxu1 %v2951_v40 }
 0x334   :  { %1204 = vmatprep.subr.mxu0 %v2954_v6  ;;  %1275 = vmatprep.subr.mxu1 %v2957_v41 }
 0x335   :  { %1205 = vmatpush1.msra.mxu0 %v2960_v42  ;;  %1276 = vmatpush1.msra.mxu1 %v2963_v45 }
 0x336   :  { %1206 = vmatprep.subr.mxu0 %v2966_v8  ;;  %1277 = vmatprep.subr.mxu1 %v2969_v10 }
 0x337   :  { %1207 = vmatpush1.msra.mxu0 %v2972_v0  ;;  %1278 = vmatpush1.msra.mxu1 %v2975_v5 }
 0x338   :  { %1208 = vmatprep.subr.mxu0 %v2978_v1  ;;  %1279 = vmatprep.subr.mxu1 %v2981_v3 }
 0x339   :  { %1209 = vmatpush1.msra.mxu0 %v2984_v7  ;;  %1280 = vmatpush1.msra.mxu1 %v2987_v2 }
 0x33a   :  { %1210 = vmatprep.subr.mxu0 %v2990_v59  ;;  %1281 = vmatprep.subr.mxu1 %v2993_v63 }
 0x33b   :  { %1211 = vmatpush1.msra.mxu0 %v2996_v18  ;;  %1282 = vmatpush1.msra.mxu1 %v2999_v9 }
 0x33c   :  { %1212 = vmatprep.subr.mxu0 %v3002_v11  ;;  %1283 = vmatprep.subr.mxu1 %v3005_v27 }
 0x33d   :  { %1213 = vmatpush1.msra.mxu0 %v3008_v60  ;;  %1284 = vmatpush1.msra.mxu1 %v3011_v4  ;;  %v3026_v60 = vld [vmem:[#allocation3 + $0x108] sm:$0xff]  ;;  %v3029_v4 = vld [vmem:[#allocation3 + $0x118] sm:$0xff] }
 0x33e   :  { %1214 = vmatprep.subr.mxu0 %v3014_v61  ;;  %1285 = vmatprep.subr.mxu1 %v3017_v35 }
 0x33f   :  { %1215 = vmatpush1.msra.mxu0 %v3020_v37  ;;  %1286 = vmatpush1.msra.mxu1 %v3023_v38 }
 0x340   :  { %1216 = vmatprep.subr.mxu0 %v3026_v60  ;;  %1287 = vmatprep.subr.mxu1 %v3029_v4 }
 0x341   :  { %1217 = vmatpush1.msra.mxu0 %v2494_v43  ;;  %1288 = vmatpush1.msra.mxu1 %v2496_v44  ;;  %v3579_v44 = vld [vmem:[#allocation52_spill] sm:$0xff] }
 0x342   :  { %1218 = vmatprep.subr.mxu0 %v2505_v46  ;;  %1289 = vmatprep.subr.mxu1 %v2507_v47 }
 0x343   :  { %1219 = vmatpush1.msra.mxu0 %v2511_v48  ;;  %1290 = vmatpush1.msra.mxu1 %v2513_v49  ;;  %v3580_v49 = vld [vmem:[#allocation54_spill] sm:$0xff] }
 0x344   :  { %1220 = vmatprep.subr.mxu0 %v2517_v50  ;;  %1291 = vmatprep.subr.mxu1 %v2519_v51 }
 0x345   :  { %1221 = vmatpush1.msra.mxu0 %v2525_v52  ;;  %1292 = vmatpush1.msra.mxu1 %v2527_v53 }
 0x346   :  { %1222 = vmatprep.subr.mxu0 %v2536_v55  ;;  %1293 = vmatprep.subr.mxu1 %v2538_v56  ;;  %v3581_v55 = vld [vmem:[#allocation55_spill] sm:$0xff] }
 0x347   :  { %1223 = vmatpush1.msra.mxu0 %v2542_v57  ;;  %1294 = vmatpush1.msra.mxu1 %v2544_v58  ;;  %v3582_v57 = vld [vmem:[#allocation53_spill] sm:$0xff] }
 0x348   :  { %1224 = vmatprep.subr.mxu0 %v3526_v62  ;;  %1295 = vmatprep.subr.mxu1 %v3527_v36 }
 0x349   :  { %1225 = vmatpush1.msra.mxu0 %v3528_v54  ;;  %1296 = vmatpush1.msra.mxu1 %v3553_v12 }
 0x34a   :  { %1226 = vmatprep.subr.mxu0 %v3554_v13  ;;  %1297 = vmatprep.subr.mxu1 %v3555_v14 }
 0x34b   :  { %1227 = vmatpush1.msra.mxu0 %v3556_v15  ;;  %1298 = vmatpush1.msra.mxu1 %v3557_v16 }
 0x34c   :  { %1228 = vmatprep.subr.mxu0 %v3558_v17  ;;  %1299 = vmatprep.subr.mxu1 %v3559_v19 }
 0x34d   :  { %1229 = vmatpush1.msra.mxu0 %v3560_v20  ;;  %1300 = vmatpush1.msra.mxu1 %v3561_v21 }
 0x34e   :  { %1230 = vmatprep.subr.mxu0 %v3562_v22  ;;  %1301 = vmatprep.subr.mxu1 %v3563_v23 }
 0x34f   :  { %1231 = vmatpush1.msra.mxu0 %v3564_v24  ;;  %1302 = vmatpush1.msra.mxu1 %v3565_v25 }
 0x350   :  { %1232 = vmatprep.subr.mxu0 %v3566_v26  ;;  %1303 = vmatprep.subr.mxu1 %v3567_v28  ;;  %v3583_v26 = vld [vmem:[#allocation26_spill] sm:$0xff] }
 0x351   :  { %1233 = vmatpush1.msra.mxu0 %v3568_v29  ;;  %1266 = vmatprep.mubr.f32.mxu0 %v3569_v30  ;;  %v3584_v28 = vld [vmem:[#allocation22_spill] sm:$0xff]  ;;  %v3106_v29 = vld [vmem:[#allocation3 + $0x100] sm:$0xff] }
 0x352   :  { %1304 = vmatpush1.msra.mxu1 %v3570_v31  ;;  %1337 = vmatprep.mubr.f32.mxu1 %v3569_v30  ;;  %v3109_v31 = vld [vmem:[#allocation3 + $0x110] sm:$0xff] }
 0x353   :  { %1377 = vmatprep.subr.mxu0 %v2934_v32  ;;  %1448 = vmatprep.subr.mxu1 %v2937_v33 }
 0x3f2   :  { %v1093_v43 = vpop.f32.mrf.mxu0  ;;  %v1164_v51 = vpop.f32.mrf.mxu1 }
 0x3f3   :  { %v1094_v46 = vadd.f32 %v1093_v43, %v3579_v44  ;;  %v1165_v58 = vadd.f32 %v1164_v51, %v3582_v57  ;;  %v3115_v43 = vld [vmem:[#allocation3 + $0xf8] sm:$0xff]  ;;  %v3118_v44 = vld [vmem:[#allocation3 + $0xe0] sm:$0xff]  ;;  %v3136_v51 = vld [vmem:[#allocation3 + $0xa8] sm:$0xff] }
 0x3f4   :  { %v1095_v47 = vpop.f32.mrf.mxu0  ;;  %v1166_v53 = vpop.f32.mrf.mxu1  ;;  %v3151_v57 = vld [vmem:[#allocation3 + $0x98] sm:$0xff] }
 0x3f5   :  { %v1995_v48 = vmul.f32 -1.442695, %v1094_v46  ;;  %v1096_v50 = vadd.f32 %v1095_v47, %v3580_v49  ;;  %v1167_v56 = vadd.f32 %v1166_v53, %v3581_v55  ;;  %v3121_v46 = vld [vmem:[#allocation3 + $0xf0] sm:$0xff]  ;;  %v3124_v47 = vld [vmem:[#allocation3 + $0xc8] sm:$0xff]  ;;  %v3130_v49 = vld [vmem:[#allocation3 + $0xc0] sm:$0xff] }
 0x3f6   :  { %v3142_v53 = vld [vmem:[#allocation3 + $0xa0] sm:$0xff]  ;;  %v3145_v55 = vld [vmem:[#allocation3 + $0xb0] sm:$0xff] }
 0x3f7   :  { %2067 = vpow2.f32 %v1995_v48  ;;  %v1996_v52 = vmul.f32 -1.442695, %v1096_v50  ;;  %v1997_v62 = vmul.f32 -1.442695, %v1167_v56  ;;  %v3127_v48 = vld [vmem:[#allocation3 + $0xd8] sm:$0xff]  ;;  %v3133_v50 = vld [vmem:[#allocation3 + $0xd0] sm:$0xff] }
 0x3f8   :  { %v3148_v56 = vld [vmem:[#allocation3 + $0x88] sm:$0xff] }
 0x3f9   :  { %2069 = vpow2.f32 %v1996_v52  ;;  %v3139_v52 = vld [vmem:[#allocation3 + $0xb8] sm:$0xff] }
 0x3fa   :  { %2071 = vtanh.f32 %v1165_v58  ;;  %v3154_v58 = vld [vmem:[#allocation3 + $0x80] sm:$0xff] }
 0x3fb   :  { %2073 = vpow2.f32 %v1997_v62  ;;  %v3157_v62 = vld [vmem:[#allocation3 + $0x90] sm:$0xff] }
 0x3fc   :  { %3585 = vst [vmem:[#allocation23_spill] sm:$0xff] %v3157_v62 }
 0x404   :  { %v2068_v36 = vpop.eup %2067 }
 0x405   :  { %v1172_v54 = vadd.f32 1.0, %v2068_v36  ;;  %v3160_v36 = vld [vmem:[#allocation3 + $0x68] sm:$0xff] }
 0x406   :  { %v2070_v12 = vpop.eup %2069  ;;  %3586 = vst [vmem:[#allocation44_spill] sm:$0xff] %v3160_v36 }
 0x407   :  { %2075 = vrcp.f32 %v1172_v54  ;;  %v1178_v13 = vadd.f32 1.0, %v2070_v12  ;;  %v2072_v14 = vpop.eup %2071  ;;  %v3163_v54 = vld [vmem:[#allocation3 + $0x78] sm:$0xff]  ;;  %v3166_v12 = vld [vmem:[#allocation3 + $0x60] sm:$0xff] }
 0x408   :  { %v2074_v15 = vpop.eup %2073  ;;  %3587 = vst [vmem:[#allocation46_spill] sm:$0xff] %v3163_v54  ;;  %3588 = vst [vmem:[#allocation47_spill] sm:$0xff] %v3166_v12 }
 0x409   :  { %2077 = vrcp.f32 %v1178_v13  ;;  %v1185_v20 = vadd.f32 1.0, %v2074_v15  ;;  %v3169_v13 = vld [vmem:[#allocation3 + $0x70] sm:$0xff]  ;;  %v3175_v15 = vld [vmem:[#allocation3 + $0x58] sm:$0xff] }
 0x40a   :  { %3589 = vst [vmem:[#allocation45_spill] sm:$0xff] %v3169_v13  ;;  %3591 = vst [vmem:[#allocation28_spill] sm:$0xff] %v3175_v15 }
 0x40b   :  { %2079 = vrcp.f32 %v1185_v20  ;;  %v3187_v20 = vld [vmem:[#allocation3 + $0x38] sm:$0xff] }
 0x40c   :  { %3595 = vst [vmem:[#allocation32_spill] sm:$0xff] %v3187_v20 }
 0x414   :  { %v2076_v16 = vpop.eup %2075 }
 0x415   :  { %v1189_v17 = vmul.f32 %v2076_v16, %v2072_v14  ;;  %v3172_v14 = vld [vmem:[#allocation3 + $0x48] sm:$0xff]  ;;  %v3178_v16 = vld [vmem:[#allocation3 + $0x40] sm:$0xff] }
 0x416   :  { %v2078_v19 = vpop.eup %2077  ;;  %3590 = vst [vmem:[#allocation27_spill] sm:$0xff] %v3172_v14  ;;  %3592 = vst [vmem:[#allocation29_spill] sm:$0xff] %v3178_v16 }
 0x417   :  { %v1188_v21 = vmul.f32 %v2078_v19, %v2945_v34  ;;  %v3112_v34 = vld [vmem:[#allocation3 + $0xe8] sm:$0xff] }
 0x418   :  { %v2080_v23 = vpop.eup %2079  ;;  %v3184_v19 = vld [vmem:[#allocation3 + $0x28] sm:$0xff] }
 0x419   :  { %v3075_v22 = vadd.f32 %v1189_v17, %v1188_v21  ;;  %v3181_v17 = vld [vmem:[#allocation3 + $0x50] sm:$0xff]  ;;  %3594 = vst [vmem:[#allocation31_spill] sm:$0xff] %v3184_v19  ;;  %v3190_v21 = vld [vmem:[#allocation3 + $0x20] sm:$0xff] }
 0x41a   :  { %3593 = vst [vmem:[#allocation30_spill] sm:$0xff] %v3181_v17  ;;  %3596 = vst [vmem:[#allocation33_spill] sm:$0xff] %v3190_v21 }
 0x41b   :  { %2081 = vtanh.f32 %v3075_v22 }
 0x428   :  { %v2082_v24 = vpop.eup %2081 }
 0x429   :  { %v1192_v25 = vmul.f32 %v2082_v24, %v2080_v23  ;;  %v3193_v23 = vld [vmem:[#allocation3 + $0x30] sm:$0xff]  ;;  %v3196_v24 = vld [vmem:[#allocation3 + $0x8] sm:$0xff] }
 0x42a   :  { %3597 = vst [vmem:[#allocation34_spill] sm:$0xff] %v3193_v23  ;;  %3598 = vst [vmem:[#allocation35_spill] sm:$0xff] %v3196_v24 }
 0x42b   :  { %1194 = vst [vmem:[#allocation8 + $0x18] sm:$0xff] %v1192_v25  ;;  %1267 = vmatmul.mubr.f32.vlgmr.msra.gmra.mxu0 %v1192_v25  ;;  %1338 = vmatmul.mubr.f32.vlgmr.msra.gmra.mxu1 %v1192_v25  ;;  %v3199_v25 = vld [vmem:[#allocation3 + $0x18] sm:$0xff] }
 0x42c   :  { %1378 = vmatpush1.msra.mxu0 %v2948_v39  ;;  %1449 = vmatpush1.msra.mxu1 %v2951_v40  ;;  %3599 = vst [vmem:[#allocation36_spill] sm:$0xff] %v3199_v25 }
 0x42d   :  { %1379 = vmatprep.subr.mxu0 %v2954_v6  ;;  %1450 = vmatprep.subr.mxu1 %v2957_v41 }
 0x42e   :  { %1380 = vmatpush1.msra.mxu0 %v2960_v42  ;;  %1451 = vmatpush1.msra.mxu1 %v2963_v45 }
 0x42f   :  { %1381 = vmatprep.subr.mxu0 %v2966_v8  ;;  %1452 = vmatprep.subr.mxu1 %v2969_v10 }
 0x430   :  { %1382 = vmatpush1.msra.mxu0 %v2972_v0  ;;  %1453 = vmatpush1.msra.mxu1 %v2975_v5 }
 0x431   :  { %1383 = vmatprep.subr.mxu0 %v2978_v1  ;;  %1454 = vmatprep.subr.mxu1 %v2981_v3 }
 0x432   :  { %1384 = vmatpush1.msra.mxu0 %v2984_v7  ;;  %1455 = vmatpush1.msra.mxu1 %v2987_v2 }
 0x433   :  { %1385 = vmatprep.subr.mxu0 %v2990_v59  ;;  %1456 = vmatprep.subr.mxu1 %v2993_v63 }
 0x434   :  { %1386 = vmatpush1.msra.mxu0 %v2996_v18  ;;  %1457 = vmatpush1.msra.mxu1 %v2999_v9 }
 0x435   :  { %1387 = vmatprep.subr.mxu0 %v3002_v11  ;;  %1458 = vmatprep.subr.mxu1 %v3005_v27 }
 0x436   :  { %1388 = vmatpush1.msra.mxu0 %v3583_v26  ;;  %1459 = vmatpush1.msra.mxu1 %v3584_v28 }
 0x437   :  { %1389 = vmatprep.subr.mxu0 %v3014_v61  ;;  %1460 = vmatprep.subr.mxu1 %v3017_v35 }
 0x438   :  { %1390 = vmatpush1.msra.mxu0 %v3020_v37  ;;  %1461 = vmatpush1.msra.mxu1 %v3023_v38 }
 0x439   :  { %1391 = vmatprep.subr.mxu0 %v3026_v60  ;;  %1462 = vmatprep.subr.mxu1 %v3029_v4 }
 0x43a   :  { %1392 = vmatpush1.msra.mxu0 %v3106_v29  ;;  %1463 = vmatpush1.msra.mxu1 %v3109_v31 }
 0x43b   :  { %1393 = vmatprep.subr.mxu0 %v3112_v34  ;;  %1464 = vmatprep.subr.mxu1 %v3115_v43 }
 0x43c   :  { %1394 = vmatpush1.msra.mxu0 %v3118_v44  ;;  %1465 = vmatpush1.msra.mxu1 %v3121_v46 }
 0x43d   :  { %1395 = vmatprep.subr.mxu0 %v3124_v47  ;;  %1466 = vmatprep.subr.mxu1 %v3127_v48 }
 0x43e   :  { %1396 = vmatpush1.msra.mxu0 %v3130_v49  ;;  %1467 = vmatpush1.msra.mxu1 %v3133_v50 }
 0x43f   :  { %1397 = vmatprep.subr.mxu0 %v3136_v51  ;;  %1468 = vmatprep.subr.mxu1 %v3139_v52 }
 0x440   :  { %1398 = vmatpush1.msra.mxu0 %v3142_v53  ;;  %1469 = vmatpush1.msra.mxu1 %v3145_v55 }
 0x441   :  { %1399 = vmatprep.subr.mxu0 %v3148_v56  ;;  %1470 = vmatprep.subr.mxu1 %v3151_v57 }
 0x442   :  { %1400 = vmatpush1.msra.mxu0 %v3154_v58  ;;  %1471 = vmatpush1.msra.mxu1 %v3157_v62 }
 0x443   :  { %1401 = vmatprep.subr.mxu0 %v3160_v36  ;;  %1472 = vmatprep.subr.mxu1 %v3163_v54  ;;  %v3605_v54 = vld [vmem:[#allocation57_spill] sm:$0xff] }
 0x444   :  { %1402 = vmatpush1.msra.mxu0 %v3166_v12  ;;  %1473 = vmatpush1.msra.mxu1 %v3169_v13  ;;  %v3604_v12 = vld [vmem:[#allocation59_spill] sm:$0xff] }
 0x445   :  { %1403 = vmatprep.subr.mxu0 %v3172_v14  ;;  %1474 = vmatprep.subr.mxu1 %v3175_v15 }
 0x446   :  { %1404 = vmatpush1.msra.mxu0 %v3178_v16  ;;  %1475 = vmatpush1.msra.mxu1 %v3181_v17  ;;  %v3603_v16 = vld [vmem:[#allocation58_spill] sm:$0xff] }
 0x447   :  { %1405 = vmatprep.subr.mxu0 %v3184_v19  ;;  %1476 = vmatprep.subr.mxu1 %v3187_v20  ;;  %v3202_v19 = vld [vmem:[#allocation3] sm:$0xff]  ;;  %v3206_v20 = vld [vmem:[#allocation3 + $0x10] sm:$0xff] }
 0x448   :  { %1406 = vmatpush1.msra.mxu0 %v3190_v21  ;;  %1477 = vmatpush1.msra.mxu1 %v3193_v23  ;;  %3600 = vst [vmem:[#allocation37_spill] sm:$0xff] %v3202_v19  ;;  %3601 = vst [vmem:[#allocation38_spill] sm:$0xff] %v3206_v20  ;;  %v3602_v23 = vld [vmem:[#allocation56_spill] sm:$0xff] }
 0x449   :  { %1407 = vmatprep.subr.mxu0 %v3196_v24  ;;  %1478 = vmatprep.subr.mxu1 %v3199_v25 }
 0x44a   :  { %1408 = vmatpush1.msra.mxu0 %v3202_v19  ;;  %1441 = vmatprep.mubr.f32.mxu0 %v3569_v30 }
 0x44b   :  { %1479 = vmatpush1.msra.mxu1 %v3206_v20  ;;  %1512 = vmatprep.mubr.f32.mxu1 %v3569_v30 }
 0x44c   :  { %1552 = vmatprep.subr.mxu0 %v2934_v32  ;;  %1623 = vmatprep.subr.mxu1 %v2937_v33 }
 0x4eb   :  { %v1268_v24 = vpop.f32.mrf.mxu0  ;;  %v1339_v19 = vpop.f32.mrf.mxu1 }
 0x4ec   :  { %v1269_v21 = vadd.f32 %v1268_v24, %v3602_v23  ;;  %v1340_v30 = vadd.f32 %v1339_v19, %v3605_v54  ;;  %v3611_v19 = vld [vmem:[#allocation27_spill] sm:$0xff] }
 0x4ed   :  { %v1270_v25 = vpop.f32.mrf.mxu0  ;;  %v1341_v13 = vpop.f32.mrf.mxu1 }
 0x4ee   :  { %v1998_v17 = vmul.f32 -1.442695, %v1269_v21  ;;  %v1271_v15 = vadd.f32 %v1270_v25, %v3603_v16  ;;  %v1342_v20 = vadd.f32 %v1341_v13, %v3604_v12  ;;  %v3610_v13 = vld [vmem:[#allocation45_spill] sm:$0xff] }
 0x4f0   :  { %2083 = vpow2.f32 %v1998_v17  ;;  %v1999_v14 = vmul.f32 -1.442695, %v1271_v15  ;;  %v2000_v36 = vmul.f32 -1.442695, %v1342_v20  ;;  %v3612_v20 = vld [vmem:[#allocation28_spill] sm:$0xff] }
 0x4f2   :  { %2085 = vpow2.f32 %v1999_v14 }
 0x4f3   :  { %2087 = vtanh.f32 %v1340_v30 }
 0x4f4   :  { %2089 = vpow2.f32 %v2000_v36  ;;  %v3609_v36 = vld [vmem:[#allocation47_spill] sm:$0xff] }
 0x4fd   :  { %v2084_v32 = vpop.eup %2083 }
 0x4fe   :  { %v1347_v62 = vadd.f32 1.0, %v2084_v32 }
 0x4ff   :  { %v2086_v33 = vpop.eup %2085 }
 0x500   :  { %2091 = vrcp.f32 %v1347_v62  ;;  %v1353_v23 = vadd.f32 1.0, %v2086_v33  ;;  %v2088_v21 = vpop.eup %2087  ;;  %v3606_v33 = vld [vmem:[#allocation23_spill] sm:$0xff]  ;;  %v3608_v62 = vld [vmem:[#allocation46_spill] sm:$0xff] }
 0x501   :  { %v2090_v16 = vpop.eup %2089 }
 0x502   :  { %2093 = vrcp.f32 %v1353_v23  ;;  %v1360_v14 = vadd.f32 1.0, %v2090_v16  ;;  %v3613_v23 = vld [vmem:[#allocation29_spill] sm:$0xff]  ;;  %v3615_v16 = vld [vmem:[#allocation31_spill] sm:$0xff] }
 0x504   :  { %2095 = vrcp.f32 %v1360_v14  ;;  %v3619_v14 = vld [vmem:[#allocation35_spill] sm:$0xff] }
 0x50d   :  { %v2092_v17 = vpop.eup %2091 }
 0x50e   :  { %v1364_v24 = vmul.f32 %v2092_v17, %v2088_v21  ;;  %v3614_v21 = vld [vmem:[#allocation30_spill] sm:$0xff]  ;;  %v3616_v17 = vld [vmem:[#allocation32_spill] sm:$0xff] }
 0x50f   :  { %v2094_v15 = vpop.eup %2093 }
 0x510   :  { %v1363_v25 = vmul.f32 %v2094_v15, %v3075_v22  ;;  %v3607_v22 = vld [vmem:[#allocation44_spill] sm:$0xff]  ;;  %v3618_v15 = vld [vmem:[#allocation34_spill] sm:$0xff] }
 0x511   :  { %v2096_v32 = vpop.eup %2095 }
 0x512   :  { %v3217_v12 = vadd.f32 %v1364_v24, %v1363_v25  ;;  %v3617_v24 = vld [vmem:[#allocation33_spill] sm:$0xff]  ;;  %v3620_v25 = vld [vmem:[#allocation36_spill] sm:$0xff] }
 0x514   :  { %2097 = vtanh.f32 %v3217_v12 }
 0x521   :  { %v2098_v30 = vpop.eup %2097 }
 0x522   :  { %v1367_v54 = vmul.f32 %v2098_v30, %v2096_v32  ;;  %v3621_v32 = vld [vmem:[#allocation37_spill] sm:$0xff]  ;;  %v3622_v30 = vmov 0.0  }
 0x524   :  { %1369 = vst [vmem:[#allocation8 + $0x20] sm:$0xff] %v1367_v54  ;;  %1442 = vmatmul.mubr.f32.vlgmr.msra.gmra.mxu0 %v1367_v54  ;;  %1513 = vmatmul.mubr.f32.vlgmr.msra.gmra.mxu1 %v1367_v54  ;;  %v3623_v54 = vld [vmem:[#allocation38_spill] sm:$0xff] }
 0x525   :  { %1553 = vmatpush1.msra.mxu0 %v2948_v39  ;;  %1624 = vmatpush1.msra.mxu1 %v2951_v40 }
 0x526   :  { %1554 = vmatprep.subr.mxu0 %v2954_v6  ;;  %1625 = vmatprep.subr.mxu1 %v2957_v41 }
 0x527   :  { %1555 = vmatpush1.msra.mxu0 %v2960_v42  ;;  %1626 = vmatpush1.msra.mxu1 %v2963_v45 }
 0x528   :  { %1556 = vmatprep.subr.mxu0 %v2966_v8  ;;  %1627 = vmatprep.subr.mxu1 %v2969_v10 }
 0x529   :  { %1557 = vmatpush1.msra.mxu0 %v2972_v0  ;;  %1628 = vmatpush1.msra.mxu1 %v2975_v5 }
 0x52a   :  { %1558 = vmatprep.subr.mxu0 %v2978_v1  ;;  %1629 = vmatprep.subr.mxu1 %v2981_v3 }
 0x52b   :  { %1559 = vmatpush1.msra.mxu0 %v2984_v7  ;;  %1630 = vmatpush1.msra.mxu1 %v2987_v2 }
 0x52c   :  { %1560 = vmatprep.subr.mxu0 %v2990_v59  ;;  %1631 = vmatprep.subr.mxu1 %v2993_v63 }
 0x52d   :  { %1561 = vmatpush1.msra.mxu0 %v2996_v18  ;;  %1632 = vmatpush1.msra.mxu1 %v2999_v9 }
 0x52e   :  { %1562 = vmatprep.subr.mxu0 %v3002_v11  ;;  %1633 = vmatprep.subr.mxu1 %v3005_v27 }
 0x52f   :  { %1563 = vmatpush1.msra.mxu0 %v3583_v26  ;;  %1634 = vmatpush1.msra.mxu1 %v3584_v28 }
 0x530   :  { %1564 = vmatprep.subr.mxu0 %v3014_v61  ;;  %1635 = vmatprep.subr.mxu1 %v3017_v35 }
 0x531   :  { %1565 = vmatpush1.msra.mxu0 %v3020_v37  ;;  %1636 = vmatpush1.msra.mxu1 %v3023_v38 }
 0x532   :  { %1566 = vmatprep.subr.mxu0 %v3026_v60  ;;  %1637 = vmatprep.subr.mxu1 %v3029_v4 }
 0x533   :  { %1567 = vmatpush1.msra.mxu0 %v3106_v29  ;;  %1638 = vmatpush1.msra.mxu1 %v3109_v31 }
 0x534   :  { %1568 = vmatprep.subr.mxu0 %v3112_v34  ;;  %1639 = vmatprep.subr.mxu1 %v3115_v43 }
 0x535   :  { %1569 = vmatpush1.msra.mxu0 %v3118_v44  ;;  %1640 = vmatpush1.msra.mxu1 %v3121_v46 }
 0x536   :  { %1570 = vmatprep.subr.mxu0 %v3124_v47  ;;  %1641 = vmatprep.subr.mxu1 %v3127_v48 }
 0x537   :  { %1571 = vmatpush1.msra.mxu0 %v3130_v49  ;;  %1642 = vmatpush1.msra.mxu1 %v3133_v50 }
 0x538   :  { %1572 = vmatprep.subr.mxu0 %v3136_v51  ;;  %1643 = vmatprep.subr.mxu1 %v3139_v52 }
 0x539   :  { %1573 = vmatpush1.msra.mxu0 %v3142_v53  ;;  %1644 = vmatpush1.msra.mxu1 %v3145_v55 }
 0x53a   :  { %1574 = vmatprep.subr.mxu0 %v3148_v56  ;;  %1645 = vmatprep.subr.mxu1 %v3151_v57 }
 0x53b   :  { %1575 = vmatpush1.msra.mxu0 %v3154_v58  ;;  %1646 = vmatpush1.msra.mxu1 %v3606_v33 }
 0x53c   :  { %1576 = vmatprep.subr.mxu0 %v3607_v22  ;;  %1647 = vmatprep.subr.mxu1 %v3608_v62  ;;  %v3629_v62 = vld [vmem:[#allocation61_spill] sm:$0xff] }
 0x53d   :  { %1577 = vmatpush1.msra.mxu0 %v3609_v36  ;;  %1648 = vmatpush1.msra.mxu1 %v3610_v13  ;;  %v3628_v36 = vld [vmem:[#allocation63_spill] sm:$0xff] }
 0x53e   :  { %1578 = vmatprep.subr.mxu0 %v3611_v19  ;;  %1649 = vmatprep.subr.mxu1 %v3612_v20 }
 0x53f   :  { %1579 = vmatpush1.msra.mxu0 %v3613_v23  ;;  %1650 = vmatpush1.msra.mxu1 %v3614_v21  ;;  %v3624_v21 = vld [vmem:[#allocation24_spill] sm:$0xff] }
 0x540   :  { %1580 = vmatprep.subr.mxu0 %v3615_v16  ;;  %1651 = vmatprep.subr.mxu1 %v3616_v17  ;;  %v3625_v16 = vld [vmem:[#allocation25_spill] sm:$0xff] }
 0x541   :  { %1581 = vmatpush1.msra.mxu0 %v3617_v24  ;;  %1652 = vmatpush1.msra.mxu1 %v3618_v15  ;;  %v3626_v24 = vld [vmem:[#allocation60_spill] sm:$0xff] }
 0x542   :  { %1582 = vmatprep.subr.mxu0 %v3619_v14  ;;  %1653 = vmatprep.subr.mxu1 %v3620_v25  ;;  %v3627_v14 = vld [vmem:[#allocation62_spill] sm:$0xff] }
 0x543   :  { %1583 = vmatpush1.msra.mxu0 %v3621_v32  ;;  %1616 = vmatprep.mubr.f32.mxu0 %v3622_v30 }
 0x544   :  { %1654 = vmatpush1.msra.mxu1 %v3623_v54  ;;  %1687 = vmatprep.mubr.f32.mxu1 %v3622_v30 }
 0x545   :  { %1727 = vmatprep.subr.mxu0 %v3624_v21  ;;  %1798 = vmatprep.subr.mxu1 %v3625_v16 }
 0x5e4   :  { %v1443_v17 = vpop.f32.mrf.mxu0  ;;  %v1514_v25 = vpop.f32.mrf.mxu1 }
 0x5e5   :  { %v1444_v23 = vadd.f32 %v1443_v17, %v3626_v24  ;;  %v1515_v30 = vadd.f32 %v1514_v25, %v3629_v62 }
 0x5e6   :  { %v1445_v15 = vpop.f32.mrf.mxu0  ;;  %v1516_v13 = vpop.f32.mrf.mxu1 }
 0x5e7   :  { %v2001_v20 = vmul.f32 -1.442695, %v1444_v23  ;;  %v1446_v19 = vadd.f32 %v1445_v15, %v3627_v14  ;;  %v1517_v54 = vadd.f32 %v1516_v13, %v3628_v36 }
 0x5e9   :  { %2099 = vpow2.f32 %v2001_v20  ;;  %v2002_v32 = vmul.f32 -1.442695, %v1446_v19  ;;  %v2003_v22 = vmul.f32 -1.442695, %v1517_v54  ;;  %v3652_v54 = vld [vmem:[#allocation68_spill] sm:$0xff] }
 0x5eb   :  { %2101 = vpow2.f32 %v2002_v32 }
 0x5ec   :  { %2103 = vtanh.f32 %v1515_v30 }
 0x5ed   :  { %2105 = vpow2.f32 %v2003_v22 }
 0x5f6   :  { %v2100_v21 = vpop.eup %2099 }
 0x5f7   :  { %v1522_v33 = vadd.f32 1.0, %v2100_v21 }
 0x5f8   :  { %v2102_v16 = vpop.eup %2101 }
 0x5f9   :  { %2107 = vrcp.f32 %v1522_v33  ;;  %v1528_v17 = vadd.f32 1.0, %v2102_v16  ;;  %v2104_v23 = vpop.eup %2103 }
 0x5fa   :  { %v2106_v24 = vpop.eup %2105 }
 0x5fb   :  { %2109 = vrcp.f32 %v1528_v17  ;;  %v1535_v14 = vadd.f32 1.0, %v2106_v24 }
 0x5fd   :  { %2111 = vrcp.f32 %v1535_v14  ;;  %v3654_v14 = vld [vmem:[#allocation71_spill] sm:$0xff] }
 0x606   :  { %v2108_v20 = vpop.eup %2107 }
 0x607   :  { %v1539_v15 = vmul.f32 %v2108_v20, %v2104_v23  ;;  %v3653_v23 = vld [vmem:[#allocation70_spill] sm:$0xff] }
 0x608   :  { %v2110_v19 = vpop.eup %2109 }
 0x609   :  { %v1538_v32 = vmul.f32 %v2110_v19, %v3217_v12 }
 0x60a   :  { %v2112_v62 = vpop.eup %2111 }
 0x60b   :  { %v3291_v36 = vadd.f32 %v1539_v15, %v1538_v32 }
 0x60d   :  { %2113 = vtanh.f32 %v3291_v36 }
 0x61a   :  { %v2114_v13 = vpop.eup %2113 }
 0x61b   :  { %v1542_v25 = vmul.f32 %v2114_v13, %v2112_v62 }
 0x61d   :  { %1544 = vst [vmem:[#allocation8 + $0x28] sm:$0xff] %v1542_v25  ;;  %1617 = vmatmul.mubr.f32.vlgmr.msra.gmra.mxu0 %v1542_v25  ;;  %1688 = vmatmul.mubr.f32.vlgmr.msra.gmra.mxu1 %v1542_v25 }
 0x61e   :  { %1728 = vmatpush1.msra.mxu0 %v2948_v39  ;;  %1799 = vmatpush1.msra.mxu1 %v2951_v40  ;;  %v3630_v39 = vld [vmem:[#allocation23_spill] sm:$0xff]  ;;  %v3631_v40 = vld [vmem:[#allocation44_spill] sm:$0xff] }
 0x61f   :  { %1729 = vmatprep.subr.mxu0 %v2954_v6  ;;  %1800 = vmatprep.subr.mxu1 %v2957_v41  ;;  %v3632_v6 = vld [vmem:[#allocation46_spill] sm:$0xff]  ;;  %v3633_v41 = vld [vmem:[#allocation47_spill] sm:$0xff] }
 0x620   :  { %1730 = vmatpush1.msra.mxu0 %v2960_v42  ;;  %1801 = vmatpush1.msra.mxu1 %v2963_v45  ;;  %v3634_v42 = vld [vmem:[#allocation45_spill] sm:$0xff]  ;;  %v3635_v45 = vld [vmem:[#allocation27_spill] sm:$0xff] }
 0x621   :  { %1731 = vmatprep.subr.mxu0 %v2966_v8  ;;  %1802 = vmatprep.subr.mxu1 %v2969_v10  ;;  %v3636_v8 = vld [vmem:[#allocation28_spill] sm:$0xff]  ;;  %v3637_v10 = vld [vmem:[#allocation29_spill] sm:$0xff] }
 0x622   :  { %1732 = vmatpush1.msra.mxu0 %v2972_v0  ;;  %1803 = vmatpush1.msra.mxu1 %v2975_v5  ;;  %v3638_v0 = vld [vmem:[#allocation30_spill] sm:$0xff]  ;;  %v3639_v5 = vld [vmem:[#allocation31_spill] sm:$0xff] }
 0x623   :  { %1733 = vmatprep.subr.mxu0 %v2978_v1  ;;  %1804 = vmatprep.subr.mxu1 %v2981_v3  ;;  %v3640_v1 = vld [vmem:[#allocation32_spill] sm:$0xff]  ;;  %v3641_v3 = vld [vmem:[#allocation33_spill] sm:$0xff] }
 0x624   :  { %1734 = vmatpush1.msra.mxu0 %v2984_v7  ;;  %1805 = vmatpush1.msra.mxu1 %v2987_v2  ;;  %v3642_v7 = vld [vmem:[#allocation34_spill] sm:$0xff]  ;;  %v3643_v2 = vld [vmem:[#allocation35_spill] sm:$0xff] }
 0x625   :  { %1735 = vmatprep.subr.mxu0 %v2990_v59  ;;  %1806 = vmatprep.subr.mxu1 %v2993_v63  ;;  %v3644_v59 = vld [vmem:[#allocation36_spill] sm:$0xff]  ;;  %v3645_v63 = vld [vmem:[#allocation37_spill] sm:$0xff] }
 0x626   :  { %1736 = vmatpush1.msra.mxu0 %v2996_v18  ;;  %1807 = vmatpush1.msra.mxu1 %v2999_v9  ;;  %v3646_v18 = vmov 0.0   ;;  %v3647_v9 = vld [vmem:[#allocation38_spill] sm:$0xff] }
 0x627   :  { %1737 = vmatprep.subr.mxu0 %v3002_v11  ;;  %1808 = vmatprep.subr.mxu1 %v3005_v27  ;;  %v3648_v27 = vld [vmem:[#allocation64_spill] sm:$0xff] }
 0x628   :  { %1738 = vmatpush1.msra.mxu0 %v3583_v26  ;;  %1809 = vmatpush1.msra.mxu1 %v3584_v28 }
 0x629   :  { %1739 = vmatprep.subr.mxu0 %v3014_v61  ;;  %1810 = vmatprep.subr.mxu1 %v3017_v35  ;;  %v3649_v35 = vld [vmem:[#allocation66_spill] sm:$0xff] }
 0x62a   :  { %1740 = vmatpush1.msra.mxu0 %v3020_v37  ;;  %1811 = vmatpush1.msra.mxu1 %v3023_v38 }
 0x62b   :  { %1741 = vmatprep.subr.mxu0 %v3026_v60  ;;  %1812 = vmatprep.subr.mxu1 %v3029_v4 }
 0x62c   :  { %1742 = vmatpush1.msra.mxu0 %v3106_v29  ;;  %1813 = vmatpush1.msra.mxu1 %v3109_v31  ;;  %v3650_v29 = vld [vmem:[#allocation67_spill] sm:$0xff] }
 0x62d   :  { %1743 = vmatprep.subr.mxu0 %v3112_v34  ;;  %1814 = vmatprep.subr.mxu1 %v3115_v43  ;;  %v3651_v34 = vld [vmem:[#allocation65_spill] sm:$0xff] }
 0x62e   :  { %1744 = vmatpush1.msra.mxu0 %v3118_v44  ;;  %1815 = vmatpush1.msra.mxu1 %v3121_v46 }
 0x62f   :  { %1745 = vmatprep.subr.mxu0 %v3124_v47  ;;  %1816 = vmatprep.subr.mxu1 %v3127_v48 }
 0x630   :  { %1746 = vmatpush1.msra.mxu0 %v3130_v49  ;;  %1817 = vmatpush1.msra.mxu1 %v3133_v50 }
 0x631   :  { %1747 = vmatprep.subr.mxu0 %v3136_v51  ;;  %1818 = vmatprep.subr.mxu1 %v3139_v52 }
 0x632   :  { %1748 = vmatpush1.msra.mxu0 %v3142_v53  ;;  %1819 = vmatpush1.msra.mxu1 %v3145_v55 }
 0x633   :  { %1749 = vmatprep.subr.mxu0 %v3148_v56  ;;  %1820 = vmatprep.subr.mxu1 %v3151_v57 }
 0x634   :  { %1750 = vmatpush1.msra.mxu0 %v3154_v58  ;;  %1821 = vmatpush1.msra.mxu1 %v3630_v39 }
 0x635   :  { %1751 = vmatprep.subr.mxu0 %v3631_v40  ;;  %1822 = vmatprep.subr.mxu1 %v3632_v6 }
 0x636   :  { %1752 = vmatpush1.msra.mxu0 %v3633_v41  ;;  %1823 = vmatpush1.msra.mxu1 %v3634_v42 }
 0x637   :  { %1753 = vmatprep.subr.mxu0 %v3635_v45  ;;  %1824 = vmatprep.subr.mxu1 %v3636_v8 }
 0x638   :  { %1754 = vmatpush1.msra.mxu0 %v3637_v10  ;;  %1825 = vmatpush1.msra.mxu1 %v3638_v0 }
 0x639   :  { %1755 = vmatprep.subr.mxu0 %v3639_v5  ;;  %1826 = vmatprep.subr.mxu1 %v3640_v1 }
 0x63a   :  { %1756 = vmatpush1.msra.mxu0 %v3641_v3  ;;  %1827 = vmatpush1.msra.mxu1 %v3642_v7 }
 0x63b   :  { %1757 = vmatprep.subr.mxu0 %v3643_v2  ;;  %1828 = vmatprep.subr.mxu1 %v3644_v59 }
 0x63c   :  { %1758 = vmatpush1.msra.mxu0 %v3645_v63  ;;  %1791 = vmatprep.mubr.f32.mxu0 %v3646_v18 }
 0x63d   :  { %1829 = vmatpush1.msra.mxu1 %v3647_v9  ;;  %1862 = vmatprep.mubr.f32.mxu1 %v3646_v18 }
 0x6dd   :  { %v1618_v11 = vpop.f32.mrf.mxu0  ;;  %v1689_v38 = vpop.f32.mrf.mxu1 }
 0x6de   :  { %v1619_v60 = vadd.f32 %v1618_v11, %v3648_v27  ;;  %v1690_v43 = vadd.f32 %v1689_v38, %v3651_v34 }
 0x6df   :  { %v1620_v4 = vpop.f32.mrf.mxu0  ;;  %v1691_v28 = vpop.f32.mrf.mxu1 }
 0x6e0   :  { %v2004_v61 = vmul.f32 -1.442695, %v1619_v60  ;;  %v1621_v37 = vadd.f32 %v1620_v4, %v3649_v35  ;;  %v1692_v31 = vadd.f32 %v1691_v28, %v3650_v29 }
 0x6e2   :  { %2115 = vpow2.f32 %v2004_v61  ;;  %v2005_v26 = vmul.f32 -1.442695, %v1621_v37  ;;  %v2006_v44 = vmul.f32 -1.442695, %v1692_v31 }
 0x6e4   :  { %2117 = vpow2.f32 %v2005_v26 }
 0x6e5   :  { %2119 = vtanh.f32 %v1690_v43 }
 0x6e6   :  { %2121 = vpow2.f32 %v2006_v44 }
 0x6ef   :  { %v2116_v46 = vpop.eup %2115 }
 0x6f0   :  { %v1697_v47 = vadd.f32 1.0, %v2116_v46 }
 0x6f1   :  { %v2118_v48 = vpop.eup %2117 }
 0x6f2   :  { %2123 = vrcp.f32 %v1697_v47  ;;  %v1703_v49 = vadd.f32 1.0, %v2118_v48  ;;  %v2120_v50 = vpop.eup %2119 }
 0x6f3   :  { %v2122_v51 = vpop.eup %2121 }
 0x6f4   :  { %2125 = vrcp.f32 %v1703_v49  ;;  %v1710_v56 = vadd.f32 1.0, %v2122_v51 }
 0x6f6   :  { %2127 = vrcp.f32 %v1710_v56 }
 0x6ff   :  { %v2124_v52 = vpop.eup %2123 }
 0x700   :  { %v1714_v53 = vmul.f32 %v2124_v52, %v2120_v50 }
 0x701   :  { %v2126_v55 = vpop.eup %2125 }
 0x702   :  { %v1713_v57 = vmul.f32 %v2126_v55, %v3291_v36  ;;  %v3655_v36 = vld [vmem:[#allocation69_spill] sm:$0xff] }
 0x703   :  { %v2128_v12 = vpop.eup %2127 }
 0x704   :  { %v1715_v58 = vadd.f32 %v1714_v53, %v1713_v57 }
 0x706   :  { %2129 = vtanh.f32 %v1715_v58 }
 0x713   :  { %v2130_v33 = vpop.eup %2129 }
 0x714   :  { %v1717_v22 = vmul.f32 %v2130_v33, %v2128_v12 }
 0x716   :  { %1719 = vst [vmem:[#allocation8 + $0x30] sm:$0xff] %v1717_v22  ;;  %1792 = vmatmul.mubr.f32.vlgmr.msra.gmra.mxu0 %v1717_v22  ;;  %1863 = vmatmul.mubr.f32.vlgmr.msra.gmra.mxu1 %v1717_v22 }
 0x7d6   :  { %v1793_v30 = vpop.f32.mrf.mxu0  ;;  %v1864_v20 = vpop.f32.mrf.mxu1 }
 0x7d7   :  { %v1794_v21 = vadd.f32 %v1793_v30, %v3652_v54  ;;  %v1865_v62 = vadd.f32 %v1864_v20, %v3655_v36 }
 0x7d8   :  { %v1795_v16 = vpop.f32.mrf.mxu0  ;;  %v1866_v19 = vpop.f32.mrf.mxu1 }
 0x7d9   :  { %v2007_v17 = vmul.f32 -1.442695, %v1794_v21  ;;  %v1796_v24 = vadd.f32 %v1795_v16, %v3653_v23  ;;  %v1867_v32 = vadd.f32 %v1866_v19, %v3654_v14 }
 0x7db   :  { %2131 = vpow2.f32 %v2007_v17  ;;  %v2008_v15 = vmul.f32 -1.442695, %v1796_v24  ;;  %v2009_v13 = vmul.f32 -1.442695, %v1867_v32 }
 0x7dd   :  { %2133 = vpow2.f32 %v2008_v15 }
 0x7de   :  { %2135 = vtanh.f32 %v1865_v62 }
 0x7df   :  { %2137 = vpow2.f32 %v2009_v13 }
 0x7e8   :  { %v2132_v25 = vpop.eup %2131 }
 0x7e9   :  { %v1872_v39 = vadd.f32 1.0, %v2132_v25 }
 0x7ea   :  { %v2134_v40 = vpop.eup %2133 }
 0x7eb   :  { %2139 = vrcp.f32 %v1872_v39  ;;  %v1878_v6 = vadd.f32 1.0, %v2134_v40  ;;  %v2136_v41 = vpop.eup %2135 }
 0x7ec   :  { %v2138_v42 = vpop.eup %2137 }
 0x7ed   :  { %2141 = vrcp.f32 %v1878_v6  ;;  %v1885_v0 = vadd.f32 1.0, %v2138_v42 }
 0x7ef   :  { %2143 = vrcp.f32 %v1885_v0 }
 0x7f8   :  { %v2140_v45 = vpop.eup %2139 }
 0x7f9   :  { %v1889_v8 = vmul.f32 %v2140_v45, %v2136_v41 }
 0x7fa   :  { %v2142_v10 = vpop.eup %2141 }
 0x7fb   :  { %v1888_v5 = vmul.f32 %v2142_v10, %v1715_v58 }
 0x7fc   :  { %v2144_v3 = vpop.eup %2143 }
 0x7fd   :  { %v1890_v1 = vadd.f32 %v1889_v8, %v1888_v5 }
 0x7ff   :  { %2145 = vtanh.f32 %v1890_v1  ;;  %1898 = vst [vmem:[#allocation12] sm:$0xff] %v1890_v1 }
 0x80c   :  { %v2146_v7 = vpop.eup %2145 }
 0x80d   :  { %v1892_v2 = vmul.f32 %v2146_v7, %v2144_v3 }
 0x80f   :  { %1894 = vst [vmem:[#allocation8 + $0x38] sm:$0xff] %v1892_v2  ;;  %1897 = vst [vmem:[#allocation10] sm:$0xff] %v1892_v2 }
 0x810   :  { %2242 = shalt.err (!%p2239_p9)
}
 0x811   :  { %1920 = dma.vmem_to_hbm [thread:$0]  %s1918_s21, 128, %s3383_s7, [#allocation11]  }
 0x812   :  { %s2251_s27 = scalar_lea.vmem %s1905_s23, 1024  ;;  %p2256_p11 = scmp.lt.s32.totalorder %s1905_s23, %s1905_s23 }
 0x813   :  { %p2252_p10 = scmp.ne.s32.totalorder %s1905_s23, %s2251_s27  ;;  %p2257_p12 = scmp.lt.s32.totalorder %s2251_s27, %s2251_s27 }
 0x815   :  { %p2258_p13 = por %p2257_p12, %p2256_p11 }
 0x817   :  { %p2259_p0 = pnand %p2258_p13, %p2252_p10 }
 0x819   :  { %2262 = shalt.err (!%p2259_p0)
}
 0x81a   :  { %s2304_s28 = smov 128   ;;  %s2305_s29 = smov 8  }
 0x81b   :  { %1910 = dma.vmem_to_hbm [thread:$0]  %s1905_s23, 1024, %s3382_s6, [#allocation9], %s2304_s28, %s2304_s28, %s2305_s29  }
 0x81c   :  { %s2271_s10 = scalar_lea.vmem %s1928_s25, 128  ;;  %p2276_p2 = scmp.lt.s32.totalorder %s1928_s25, %s1928_s25 }
 0x81d   :  { %p2272_p1 = scmp.ne.s32.totalorder %s1928_s25, %s2271_s10  ;;  %p2277_p3 = scmp.lt.s32.totalorder %s2271_s10, %s2271_s10 }
 0x81f   :  { %p2278_p4 = por %p2277_p3, %p2276_p2 }
 0x821   :  { %p2279_p5 = pnand %p2278_p4, %p2272_p1 }
 0x823   :  { %2282 = shalt.err (!%p2279_p5)
}
 0x824   :  { %1930 = dma.vmem_to_hbm [thread:$0]  %s1928_s25, 128, %s3384_s8, [#allocation11]  }
 0x825   :  { %2295 = dma.done.wait [#allocation9], 1024  }
 0x826   :  { %2296 = vsyncadd [#allocation9], 4294966272 }
 0x827   :  { %2297 = dma.done.wait [#allocation11], 256  }
 0x828   :  { %2298 = vsyncadd [#allocation11], 4294967040 }
 0x829   :  { %1940 = vsyncpa [#allocation9], 1 }
 0x82a   :  { %1941 = vsyncpa [#allocation11], 1 }
 0x82b   :  { %1942 = vsyncmov [#allocation7] }
 0x82e   :  { %s1943_s12 = vpop.sfrf %1942 }
 0x82f   :  { %p2010_p6 = scmp.ne.s32.totalorder %s1943_s12, 0 }
 0x831   :  { %1947 = shalt.err (%p2010_p6)  }
 0x832   :  { %1949 = vsyncmov [#allocation7 + $0x1] }
 0x835   :  { %s1950_s6 = vpop.sfrf %1949 }
 0x836   :  { %p2011_p7 = scmp.ne.s32.totalorder %s1950_s6, 0 }
 0x838   :  { %1954 = shalt.err (%p2011_p7)  }

</bundles_post_ra>
